<compile_context>
chip_gen: v5e
topology: v5e:2x2
jax: 0.10.0
libtpu: 0.0.40
codegen_flags: <defaults>
</compile_context>

<pallas_src>
import jax
import jax.numpy as jnp
from jax.experimental import pallas as pl
from jax.experimental.pallas import tpu as pltpu


def _round_up(x, m):
    return (x + m - 1) // m * m


# ----------------------------------------------------------------------------
# Pallas kernels
#   patches: (tm, K)  bf16  (already sign-binarized, zero padding rows are 0)
#   weights: (K,  Np) bf16  (already sign-binarized, zero-padded columns)
#   alpha:   (1,  Np) f32   (mean |W| per output channel, 0 in padded columns)
#   resid:   (tm, Np) f32   (optional fused residual)
#   out:     (tm, Np) f32
# ----------------------------------------------------------------------------
def _bin_conv_kernel(p_ref, w_ref, a_ref, o_ref):
    acc = jnp.dot(p_ref[...], w_ref[...], preferred_element_type=jnp.float32)
    o_ref[...] = acc * a_ref[...]


def _bin_conv_res_kernel(p_ref, w_ref, a_ref, id_ref, o_ref):
    acc = jnp.dot(p_ref[...], w_ref[...], preferred_element_type=jnp.float32)
    # fused residual add + hardtanh epilogue
    o_ref[...] = jnp.clip(acc * a_ref[...] + id_ref[...], -1.0, 1.0)


# ----------------------------------------------------------------------------
# Binary 3x3 conv (padding=1) with optional fused residual + hardtanh.
# Equivalent to: y = F.conv2d(sign(x), sign(w) * alpha, stride, padding=1)
#                (+ residual, hardtanh if residual is given)
# x: NHWC f32; w: OIHW f32; residual: NHWC f32 (output-shaped); returns NHWC f32
# ----------------------------------------------------------------------------
def binary_conv2d_bdc(x, w, stride, residual=None):
    B, H, W_, Cin = x.shape
    Cout = w.shape[0]
    Ho = (H + 2 - 3) // stride + 1
    Wo = (W_ + 2 - 3) // stride + 1

    # ---- operand preparation (glue JAX) ------------------------------------
    # sign-binarize activations once, cast to bf16 (lossless for {-1,0,+1});
    # sign(0)=0 -> zero-padded border contributes nothing (matches previous rev).
    x_sign = jnp.sign(x).astype(jnp.bfloat16)
    xp = jnp.pad(x_sign, ((0, 0), (1, 1), (1, 1), (0, 0)))
    cols = []
    for dh in range(3):
        for dw in range(3):
            cols.append(xp[:, dh:dh + (Ho - 1) * stride + 1:stride,
                            dw:dw + (Wo - 1) * stride + 1:stride, :])
    # patch element order (kh, kw, cin)
    patches = jnp.stack(cols, axis=3).reshape(B * Ho * Wo, 9 * Cin)

    # weights: OIHW -> (kh, kw, cin, cout) -> (9*Cin, Cout), sign-binarized once
    # in the wrapper (hoisted out of the kernel).  alpha stays f32 post-matmul.
    w_mat = jnp.transpose(w, (2, 3, 1, 0)).reshape(9 * Cin, Cout)
    w_bin = jnp.sign(w_mat).astype(jnp.bfloat16)
    alpha = jnp.mean(jnp.abs(w), axis=(1, 2, 3)).reshape(1, Cout).astype(jnp.float32)

    M, K = patches.shape
    # lane-dense output: pad Cout up to a multiple of 128
    Np = max(128, _round_up(Cout, 128))
    # big M tile (multiple of 128), <=512 to stay inside v7x scoped VMEM
    Mp = _round_up(M, 128)
    tm = min(512, Mp)
    Mp = _round_up(Mp, tm)

    patches_p = jnp.pad(patches, ((0, Mp - M), (0, 0)))
    w_p = jnp.pad(w_bin, ((0, 0), (0, Np - Cout)))
    a_p = jnp.pad(alpha, ((0, 0), (0, Np - Cout)))

    grid = (Mp // tm,)
    cparams = pltpu.CompilerParams(dimension_semantics=("parallel",))
    out_shape = jax.ShapeDtypeStruct((Mp, Np), jnp.float32)

    if residual is None:
        out = pl.pallas_call(
            _bin_conv_kernel,
            out_shape=out_shape,
            grid=grid,
            in_specs=[
                pl.BlockSpec((tm, K), lambda i: (i, 0)),
                pl.BlockSpec((K, Np), lambda i: (0, 0)),
                pl.BlockSpec((1, Np), lambda i: (0, 0)),
            ],
            out_specs=pl.BlockSpec((tm, Np), lambda i: (i, 0)),
            compiler_params=cparams,
        )(patches_p, w_p, a_p)
    else:
        res = residual.reshape(B * Ho * Wo, Cout).astype(jnp.float32)
        res_p = jnp.pad(res, ((0, Mp - M), (0, Np - Cout)))
        out = pl.pallas_call(
            _bin_conv_res_kernel,
            out_shape=out_shape,
            grid=grid,
            in_specs=[
                pl.BlockSpec((tm, K), lambda i: (i, 0)),
                pl.BlockSpec((K, Np), lambda i: (0, 0)),
                pl.BlockSpec((1, Np), lambda i: (0, 0)),
                pl.BlockSpec((tm, Np), lambda i: (i, 0)),
            ],
            out_specs=pl.BlockSpec((tm, Np), lambda i: (i, 0)),
            compiler_params=cparams,
        )(patches_p, w_p, a_p, res_p)

    return out[:M, :Cout].reshape(B, Ho, Wo, Cout)


# ----------------------------------------------------------------------------
# Blocks (with_bn=False path)
# ----------------------------------------------------------------------------
def _avg_pool2(x):  # NHWC 2x2 / stride 2 (assumes even H, W)
    B, H, W, C = x.shape
    return x.reshape(B, H // 2, 2, W // 2, 2, C).mean(axis=(2, 4))


def basic_binary_block(x, blk):
    """BasicBinaryBlockBDC: two binary convs, residual + hardtanh after each conv."""
    stride = blk["stride"]
    if "w_ds" in blk:
        identity = binary_conv2d_bdc(x, blk["w_ds"], stride)       # BinaryConv2dBDC shortcut
    else:
        identity = x
    out = binary_conv2d_bdc(x, blk["w1"], stride, residual=identity)   # fused add + hardtanh
    out2 = binary_conv2d_bdc(out, blk["w2"], 1, residual=out)          # fused add + hardtanh
    return out2


def downsample_binary_block(x, blk):
    """DownsampleBinaryBlockBDC: spatial /2 via avg-pool, BinaryConv2dBDC_Down shortcut."""
    xd = _avg_pool2(x)
    identity = binary_conv2d_bdc(xd, blk["w_ds"], 1)               # BinaryConv2dBDC_Down
    out = binary_conv2d_bdc(xd, blk["w1"], 1, residual=identity)
    out2 = binary_conv2d_bdc(out, blk["w2"], 1, residual=out)
    return out2


# ----------------------------------------------------------------------------
# Module: parameters + forward
# ----------------------------------------------------------------------------
def init_params(key, numC_input, num_layer=(2, 2, 2), stride=(2, 2, 2), num_channels=None):
    assert len(num_layer) == len(stride)
    if num_channels is None:
        num_channels = [numC_input * 2 ** (i + 1) for i in range(len(num_layer))]
    params = []
    curr = numC_input
    for i in range(len(num_layer)):
        stage = []
        cout = num_channels[i]
        key, k1, k2, k3 = jax.random.split(key, 4)
        stage.append({
            "type": "basic" if i == 0 else "down",
            "stride": stride[i] if i == 0 else 1,
            "w1": 0.1 * jax.random.normal(k1, (cout, curr, 3, 3), jnp.float32),
            "w2": 0.1 * jax.random.normal(k2, (cout, cout, 3, 3), jnp.float32),
            "w_ds": 0.1 * jax.random.normal(k3, (cout, curr, 3, 3), jnp.float32),
        })
        curr = cout
        for _ in range(num_layer[i] - 1):
            key, k1, k2 = jax.random.split(key, 3)
            stage.append({
                "type": "basic",
                "stride": 1,
                "w1": 0.1 * jax.random.normal(k1, (cout, cout, 3, 3), jnp.float32),
                "w2": 0.1 * jax.random.normal(k2, (cout, cout, 3, 3), jnp.float32),
            })
        params.append(stage)
    return params


def binary_resnet_bdc_down_forward(x_nchw, params, backbone_output_ids=None):
    """x_nchw: (B, C, H, W).  Returns list of NCHW feature maps per stage."""
    if backbone_output_ids is None:
        backbone_output_ids = range(len(params))
    x = jnp.transpose(x_nchw, (0, 2, 3, 1))   # NCHW -> NHWC
    feats = []
    for lid, stage in enumerate(params):
        for blk in stage:
            if blk["type"] == "down":
                x = downsample_binary_block(x, blk)
            else:
                x = basic_binary_block(x, blk)
        if lid in backbone_output_ids:
            feats.append(jnp.transpose(x, (0, 3, 1, 2)))   # back to NCHW
    return feats


if __name__ == "__main__":
    key = jax.random.PRNGKey(0)
    kx, kp = jax.random.split(key)

    B, C, H, W = 2, 4, 16, 16
    x = jax.random.normal(kx, (B, C, H, W), jnp.float32)
    params = init_params(kp, numC_input=C, num_layer=[2, 2, 2], stride=[2, 2, 2])

    fwd = jax.jit(lambda xx: binary_resnet_bdc_down_forward(xx, params))
    feats = fwd(x)
    feats = jax.block_until_ready(feats)

    assert feats[0].shape == (B, 2 * C, H // 2, W // 2), feats[0].shape
    assert feats[1].shape == (B, 4 * C, H // 4, W // 4), feats[1].shape
    assert feats[2].shape == (B, 8 * C, H // 8, W // 8), feats[2].shape
    assert all(bool(jnp.all(jnp.isfinite(f))) for f in feats)
    print("KERNEL_OK")
</pallas_src>

<mosaic_0001>
module attributes {stable_mosaic.version = 11 : i64} {
  func.func @_bin_conv_kernel(%arg0: i32, %arg1: memref<128x36xbf16, #tpu.memory_space<vmem>>, %arg2: memref<36x128xbf16, #tpu.memory_space<vmem>>, %arg3: memref<1x128xf32, #tpu.memory_space<vmem>>, %arg4: memref<128x128xf32, #tpu.memory_space<vmem>>) attributes {dimension_semantics = [#tpu.dimension_semantics<parallel>], iteration_bounds = array<i64: 1>, scalar_prefetch = 0 : i64, scratch_operands = 0 : i64, tpu.core_type = #tpu.core_type<tc>, window_params = [{transform_indices = @transform_0, window_bounds = array<i64: 128, 36>}, {pipeline_mode = #tpu.pipeline_mode<synchronous>, transform_indices = @transform_1, window_bounds = array<i64: 36, 128>}, {pipeline_mode = #tpu.pipeline_mode<synchronous>, transform_indices = @transform_2, window_bounds = array<i64: 1, 128>}, {transform_indices = @transform_3, window_bounds = array<i64: 128, 128>}]} {
    %c0 = arith.constant 0 : index
    %c0_0 = arith.constant 0 : index
    %0 = vector.load %arg1[%c0, %c0_0] : memref<128x36xbf16, #tpu.memory_space<vmem>>, vector<128x36xbf16>
    %c0_1 = arith.constant 0 : index
    %c0_2 = arith.constant 0 : index
    %1 = vector.load %arg2[%c0_1, %c0_2] : memref<36x128xbf16, #tpu.memory_space<vmem>>, vector<36x128xbf16>
    %cst = arith.constant dense<0.000000e+00> : vector<128x128xf32>
    %2 = tpu.matmul %0, %1, %cst {dimension_numbers = #tpu.dot_dimension_numbers<[1], [0], [0], [1], [0, 0, 1, 1], [], []>} : vector<128x36xbf16>, vector<36x128xbf16>, vector<128x128xf32> -> vector<128x128xf32>
    %c0_3 = arith.constant 0 : index
    %c0_4 = arith.constant 0 : index
    %3 = vector.load %arg3[%c0_3, %c0_4] : memref<1x128xf32, #tpu.memory_space<vmem>>, vector<1x128xf32>
    %4 = vector.broadcast %3 : vector<1x128xf32> to vector<128x128xf32>
    %5 = arith.mulf %2, %4 : vector<128x128xf32>
    %c0_5 = arith.constant 0 : index
    %c0_6 = arith.constant 0 : index
    %6 = vector.load %arg4[%c0_5, %c0_6] : memref<128x128xf32, #tpu.memory_space<vmem>>, vector<128x128xf32>
    tpu.vector_store %arg4[%c0_5, %c0_6], %5 {strides = array<i32>} : memref<128x128xf32, #tpu.memory_space<vmem>>, vector<128x128xf32>,
    return
  }
  func.func @transform_0(%arg0: i32) -> (i32, i32) {
    %c0_i32 = arith.constant 0 : i32
    %c0_i32_0 = arith.constant 0 : i32
    return %arg0, %c0_i32 : i32, i32
  }
  func.func @transform_1(%arg0: i32) -> (i32, i32) {
    %c0_i32 = arith.constant 0 : i32
    %c0_i32_0 = arith.constant 0 : i32
    %c0_i32_1 = arith.constant 0 : i32
    return %c0_i32, %c0_i32_0 : i32, i32
  }
  func.func @transform_2(%arg0: i32) -> (i32, i32) {
    %c0_i32 = arith.constant 0 : i32
    %c0_i32_0 = arith.constant 0 : i32
    %c0_i32_1 = arith.constant 0 : i32
    return %c0_i32, %c0_i32_0 : i32, i32
  }
  func.func @transform_3(%arg0: i32) -> (i32, i32) {
    %c0_i32 = arith.constant 0 : i32
    %c0_i32_0 = arith.constant 0 : i32
    return %arg0, %c0_i32 : i32, i32
  }
}

module attributes {stable_mosaic.version = 11 : i64} {
  func.func @_bin_conv_res_kernel(%arg0: i32, %arg1: memref<128x36xbf16, #tpu.memory_space<vmem>>, %arg2: memref<36x128xbf16, #tpu.memory_space<vmem>>, %arg3: memref<1x128xf32, #tpu.memory_space<vmem>>, %arg4: memref<128x128xf32, #tpu.memory_space<vmem>>, %arg5: memref<128x128xf32, #tpu.memory_space<vmem>>) attributes {dimension_semantics = [#tpu.dimension_semantics<parallel>], iteration_bounds = array<i64: 1>, scalar_prefetch = 0 : i64, scratch_operands = 0 : i64, tpu.core_type = #tpu.core_type<tc>, window_params = [{transform_indices = @transform_0, window_bounds = array<i64: 128, 36>}, {pipeline_mode = #tpu.pipeline_mode<synchronous>, transform_indices = @transform_1, window_bounds = array<i64: 36, 128>}, {pipeline_mode = #tpu.pipeline_mode<synchronous>, transform_indices = @transform_2, window_bounds = array<i64: 1, 128>}, {transform_indices = @transform_3, window_bounds = array<i64: 128, 128>}, {transform_indices = @transform_4, window_bounds = array<i64: 128, 128>}]} {
    %c0 = arith.constant 0 : index
    %c0_0 = arith.constant 0 : index
    %0 = vector.load %arg1[%c0, %c0_0] : memref<128x36xbf16, #tpu.memory_space<vmem>>, vector<128x36xbf16>
    %c0_1 = arith.constant 0 : index
    %c0_2 = arith.constant 0 : index
    %1 = vector.load %arg2[%c0_1, %c0_2] : memref<36x128xbf16, #tpu.memory_space<vmem>>, vector<36x128xbf16>
    %cst = arith.constant dense<0.000000e+00> : vector<128x128xf32>
    %2 = tpu.matmul %0, %1, %cst {dimension_numbers = #tpu.dot_dimension_numbers<[1], [0], [0], [1], [0, 0, 1, 1], [], []>} : vector<128x36xbf16>, vector<36x128xbf16>, vector<128x128xf32> -> vector<128x128xf32>
    %c0_3 = arith.constant 0 : index
    %c0_4 = arith.constant 0 : index
    %3 = vector.load %arg3[%c0_3, %c0_4] : memref<1x128xf32, #tpu.memory_space<vmem>>, vector<1x128xf32>
    %4 = vector.broadcast %3 : vector<1x128xf32> to vector<128x128xf32>
    %5 = arith.mulf %2, %4 : vector<128x128xf32>
    %c0_5 = arith.constant 0 : index
    %c0_6 = arith.constant 0 : index
    %6 = vector.load %arg4[%c0_5, %c0_6] : memref<128x128xf32, #tpu.memory_space<vmem>>, vector<128x128xf32>
    %7 = arith.addf %5, %6 : vector<128x128xf32>
    %cst_7 = arith.constant -1.000000e+00 : f32
    %cst_8 = arith.constant 1.000000e+00 : f32
    %8 = vector.broadcast %cst_7 : f32 to vector<128x128xf32>
    %9 = arith.maximumf %8, %7 : vector<128x128xf32>
    %10 = vector.broadcast %cst_8 : f32 to vector<128x128xf32>
    %11 = arith.minimumf %10, %9 : vector<128x128xf32>
    %c0_9 = arith.constant 0 : index
    %c0_10 = arith.constant 0 : index
    %12 = vector.load %arg5[%c0_9, %c0_10] : memref<128x128xf32, #tpu.memory_space<vmem>>, vector<128x128xf32>
    tpu.vector_store %arg5[%c0_9, %c0_10], %11 {strides = array<i32>} : memref<128x128xf32, #tpu.memory_space<vmem>>, vector<128x128xf32>,
    return
  }
  func.func @transform_0(%arg0: i32) -> (i32, i32) {
    %c0_i32 = arith.constant 0 : i32
    %c0_i32_0 = arith.constant 0 : i32
    return %arg0, %c0_i32 : i32, i32
  }
  func.func @transform_1(%arg0: i32) -> (i32, i32) {
    %c0_i32 = arith.constant 0 : i32
    %c0_i32_0 = arith.constant 0 : i32
    %c0_i32_1 = arith.constant 0 : i32
    return %c0_i32, %c0_i32_0 : i32, i32
  }
  func.func @transform_2(%arg0: i32) -> (i32, i32) {
    %c0_i32 = arith.constant 0 : i32
    %c0_i32_0 = arith.constant 0 : i32
    %c0_i32_1 = arith.constant 0 : i32
    return %c0_i32, %c0_i32_0 : i32, i32
  }
  func.func @transform_3(%arg0: i32) -> (i32, i32) {
    %c0_i32 = arith.constant 0 : i32
    %c0_i32_0 = arith.constant 0 : i32
    return %arg0, %c0_i32 : i32, i32
  }
  func.func @transform_4(%arg0: i32) -> (i32, i32) {
    %c0_i32 = arith.constant 0 : i32
    %c0_i32_0 = arith.constant 0 : i32
    return %arg0, %c0_i32 : i32, i32
  }
}

module attributes {stable_mosaic.version = 11 : i64} {
  func.func @_bin_conv_res_kernel(%arg0: i32, %arg1: memref<128x72xbf16, #tpu.memory_space<vmem>>, %arg2: memref<72x128xbf16, #tpu.memory_space<vmem>>, %arg3: memref<1x128xf32, #tpu.memory_space<vmem>>, %arg4: memref<128x128xf32, #tpu.memory_space<vmem>>, %arg5: memref<128x128xf32, #tpu.memory_space<vmem>>) attributes {dimension_semantics = [#tpu.dimension_semantics<parallel>], iteration_bounds = array<i64: 1>, scalar_prefetch = 0 : i64, scratch_operands = 0 : i64, tpu.core_type = #tpu.core_type<tc>, window_params = [{transform_indices = @transform_0, window_bounds = array<i64: 128, 72>}, {pipeline_mode = #tpu.pipeline_mode<synchronous>, transform_indices = @transform_1, window_bounds = array<i64: 72, 128>}, {pipeline_mode = #tpu.pipeline_mode<synchronous>, transform_indices = @transform_2, window_bounds = array<i64: 1, 128>}, {transform_indices = @transform_3, window_bounds = array<i64: 128, 128>}, {transform_indices = @transform_4, window_bounds = array<i64: 128, 128>}]} {
    %c0 = arith.constant 0 : index
    %c0_0 = arith.constant 0 : index
    %0 = vector.load %arg1[%c0, %c0_0] : memref<128x72xbf16, #tpu.memory_space<vmem>>, vector<128x72xbf16>
    %c0_1 = arith.constant 0 : index
    %c0_2 = arith.constant 0 : index
    %1 = vector.load %arg2[%c0_1, %c0_2] : memref<72x128xbf16, #tpu.memory_space<vmem>>, vector<72x128xbf16>
    %cst = arith.constant dense<0.000000e+00> : vector<128x128xf32>
    %2 = tpu.matmul %0, %1, %cst {dimension_numbers = #tpu.dot_dimension_numbers<[1], [0], [0], [1], [0, 0, 1, 1], [], []>} : vector<128x72xbf16>, vector<72x128xbf16>, vector<128x128xf32> -> vector<128x128xf32>
    %c0_3 = arith.constant 0 : index
    %c0_4 = arith.constant 0 : index
    %3 = vector.load %arg3[%c0_3, %c0_4] : memref<1x128xf32, #tpu.memory_space<vmem>>, vector<1x128xf32>
    %4 = vector.broadcast %3 : vector<1x128xf32> to vector<128x128xf32>
    %5 = arith.mulf %2, %4 : vector<128x128xf32>
    %c0_5 = arith.constant 0 : index
    %c0_6 = arith.constant 0 : index
    %6 = vector.load %arg4[%c0_5, %c0_6] : memref<128x128xf32, #tpu.memory_space<vmem>>, vector<128x128xf32>
    %7 = arith.addf %5, %6 : vector<128x128xf32>
    %cst_7 = arith.constant -1.000000e+00 : f32
    %cst_8 = arith.constant 1.000000e+00 : f32
    %8 = vector.broadcast %cst_7 : f32 to vector<128x128xf32>
    %9 = arith.maximumf %8, %7 : vector<128x128xf32>
    %10 = vector.broadcast %cst_8 : f32 to vector<128x128xf32>
    %11 = arith.minimumf %10, %9 : vector<128x128xf32>
    %c0_9 = arith.constant 0 : index
    %c0_10 = arith.constant 0 : index
    %12 = vector.load %arg5[%c0_9, %c0_10] : memref<128x128xf32, #tpu.memory_space<vmem>>, vector<128x128xf32>
    tpu.vector_store %arg5[%c0_9, %c0_10], %11 {strides = array<i32>} : memref<128x128xf32, #tpu.memory_space<vmem>>, vector<128x128xf32>,
    return
  }
  func.func @transform_0(%arg0: i32) -> (i32, i32) {
    %c0_i32 = arith.constant 0 : i32
    %c0_i32_0 = arith.constant 0 : i32
    return %arg0, %c0_i32 : i32, i32
  }
  func.func @transform_1(%arg0: i32) -> (i32, i32) {
    %c0_i32 = arith.constant 0 : i32
    %c0_i32_0 = arith.constant 0 : i32
    %c0_i32_1 = arith.constant 0 : i32
    return %c0_i32, %c0_i32_0 : i32, i32
  }
  func.func @transform_2(%arg0: i32) -> (i32, i32) {
    %c0_i32 = arith.constant 0 : i32
    %c0_i32_0 = arith.constant 0 : i32
    %c0_i32_1 = arith.constant 0 : i32
    return %c0_i32, %c0_i32_0 : i32, i32
  }
  func.func @transform_3(%arg0: i32) -> (i32, i32) {
    %c0_i32 = arith.constant 0 : i32
    %c0_i32_0 = arith.constant 0 : i32
    return %arg0, %c0_i32 : i32, i32
  }
  func.func @transform_4(%arg0: i32) -> (i32, i32) {
    %c0_i32 = arith.constant 0 : i32
    %c0_i32_0 = arith.constant 0 : i32
    return %arg0, %c0_i32 : i32, i32
  }
}

module attributes {stable_mosaic.version = 11 : i64} {
  func.func @_bin_conv_kernel(%arg0: i32, %arg1: memref<128x72xbf16, #tpu.memory_space<vmem>>, %arg2: memref<72x128xbf16, #tpu.memory_space<vmem>>, %arg3: memref<1x128xf32, #tpu.memory_space<vmem>>, %arg4: memref<128x128xf32, #tpu.memory_space<vmem>>) attributes {dimension_semantics = [#tpu.dimension_semantics<parallel>], iteration_bounds = array<i64: 1>, scalar_prefetch = 0 : i64, scratch_operands = 0 : i64, tpu.core_type = #tpu.core_type<tc>, window_params = [{transform_indices = @transform_0, window_bounds = array<i64: 128, 72>}, {pipeline_mode = #tpu.pipeline_mode<synchronous>, transform_indices = @transform_1, window_bounds = array<i64: 72, 128>}, {pipeline_mode = #tpu.pipeline_mode<synchronous>, transform_indices = @transform_2, window_bounds = array<i64: 1, 128>}, {transform_indices = @transform_3, window_bounds = array<i64: 128, 128>}]} {
    %c0 = arith.constant 0 : index
    %c0_0 = arith.constant 0 : index
    %0 = vector.load %arg1[%c0, %c0_0] : memref<128x72xbf16, #tpu.memory_space<vmem>>, vector<128x72xbf16>
    %c0_1 = arith.constant 0 : index
    %c0_2 = arith.constant 0 : index
    %1 = vector.load %arg2[%c0_1, %c0_2] : memref<72x128xbf16, #tpu.memory_space<vmem>>, vector<72x128xbf16>
    %cst = arith.constant dense<0.000000e+00> : vector<128x128xf32>
    %2 = tpu.matmul %0, %1, %cst {dimension_numbers = #tpu.dot_dimension_numbers<[1], [0], [0], [1], [0, 0, 1, 1], [], []>} : vector<128x72xbf16>, vector<72x128xbf16>, vector<128x128xf32> -> vector<128x128xf32>
    %c0_3 = arith.constant 0 : index
    %c0_4 = arith.constant 0 : index
    %3 = vector.load %arg3[%c0_3, %c0_4] : memref<1x128xf32, #tpu.memory_space<vmem>>, vector<1x128xf32>
    %4 = vector.broadcast %3 : vector<1x128xf32> to vector<128x128xf32>
    %5 = arith.mulf %2, %4 : vector<128x128xf32>
    %c0_5 = arith.constant 0 : index
    %c0_6 = arith.constant 0 : index
    %6 = vector.load %arg4[%c0_5, %c0_6] : memref<128x128xf32, #tpu.memory_space<vmem>>, vector<128x128xf32>
    tpu.vector_store %arg4[%c0_5, %c0_6], %5 {strides = array<i32>} : memref<128x128xf32, #tpu.memory_space<vmem>>, vector<128x128xf32>,
    return
  }
  func.func @transform_0(%arg0: i32) -> (i32, i32) {
    %c0_i32 = arith.constant 0 : i32
    %c0_i32_0 = arith.constant 0 : i32
    return %arg0, %c0_i32 : i32, i32
  }
  func.func @transform_1(%arg0: i32) -> (i32, i32) {
    %c0_i32 = arith.constant 0 : i32
    %c0_i32_0 = arith.constant 0 : i32
    %c0_i32_1 = arith.constant 0 : i32
    return %c0_i32, %c0_i32_0 : i32, i32
  }
  func.func @transform_2(%arg0: i32) -> (i32, i32) {
    %c0_i32 = arith.constant 0 : i32
    %c0_i32_0 = arith.constant 0 : i32
    %c0_i32_1 = arith.constant 0 : i32
    return %c0_i32, %c0_i32_0 : i32, i32
  }
  func.func @transform_3(%arg0: i32) -> (i32, i32) {
    %c0_i32 = arith.constant 0 : i32
    %c0_i32_0 = arith.constant 0 : i32
    return %arg0, %c0_i32 : i32, i32
  }
}

module attributes {stable_mosaic.version = 11 : i64} {
  func.func @_bin_conv_res_kernel(%arg0: i32, %arg1: memref<128x144xbf16, #tpu.memory_space<vmem>>, %arg2: memref<144x128xbf16, #tpu.memory_space<vmem>>, %arg3: memref<1x128xf32, #tpu.memory_space<vmem>>, %arg4: memref<128x128xf32, #tpu.memory_space<vmem>>, %arg5: memref<128x128xf32, #tpu.memory_space<vmem>>) attributes {dimension_semantics = [#tpu.dimension_semantics<parallel>], iteration_bounds = array<i64: 1>, scalar_prefetch = 0 : i64, scratch_operands = 0 : i64, tpu.core_type = #tpu.core_type<tc>, window_params = [{transform_indices = @transform_0, window_bounds = array<i64: 128, 144>}, {pipeline_mode = #tpu.pipeline_mode<synchronous>, transform_indices = @transform_1, window_bounds = array<i64: 144, 128>}, {pipeline_mode = #tpu.pipeline_mode<synchronous>, transform_indices = @transform_2, window_bounds = array<i64: 1, 128>}, {transform_indices = @transform_3, window_bounds = array<i64: 128, 128>}, {transform_indices = @transform_4, window_bounds = array<i64: 128, 128>}]} {
    %c0 = arith.constant 0 : index
    %c0_0 = arith.constant 0 : index
    %0 = vector.load %arg1[%c0, %c0_0] : memref<128x144xbf16, #tpu.memory_space<vmem>>, vector<128x144xbf16>
    %c0_1 = arith.constant 0 : index
    %c0_2 = arith.constant 0 : index
    %1 = vector.load %arg2[%c0_1, %c0_2] : memref<144x128xbf16, #tpu.memory_space<vmem>>, vector<144x128xbf16>
    %cst = arith.constant dense<0.000000e+00> : vector<128x128xf32>
    %2 = tpu.matmul %0, %1, %cst {dimension_numbers = #tpu.dot_dimension_numbers<[1], [0], [0], [1], [0, 0, 1, 1], [], []>} : vector<128x144xbf16>, vector<144x128xbf16>, vector<128x128xf32> -> vector<128x128xf32>
    %c0_3 = arith.constant 0 : index
    %c0_4 = arith.constant 0 : index
    %3 = vector.load %arg3[%c0_3, %c0_4] : memref<1x128xf32, #tpu.memory_space<vmem>>, vector<1x128xf32>
    %4 = vector.broadcast %3 : vector<1x128xf32> to vector<128x128xf32>
    %5 = arith.mulf %2, %4 : vector<128x128xf32>
    %c0_5 = arith.constant 0 : index
    %c0_6 = arith.constant 0 : index
    %6 = vector.load %arg4[%c0_5, %c0_6] : memref<128x128xf32, #tpu.memory_space<vmem>>, vector<128x128xf32>
    %7 = arith.addf %5, %6 : vector<128x128xf32>
    %cst_7 = arith.constant -1.000000e+00 : f32
    %cst_8 = arith.constant 1.000000e+00 : f32
    %8 = vector.broadcast %cst_7 : f32 to vector<128x128xf32>
    %9 = arith.maximumf %8, %7 : vector<128x128xf32>
    %10 = vector.broadcast %cst_8 : f32 to vector<128x128xf32>
    %11 = arith.minimumf %10, %9 : vector<128x128xf32>
    %c0_9 = arith.constant 0 : index
    %c0_10 = arith.constant 0 : index
    %12 = vector.load %arg5[%c0_9, %c0_10] : memref<128x128xf32, #tpu.memory_space<vmem>>, vector<128x128xf32>
    tpu.vector_store %arg5[%c0_9, %c0_10], %11 {strides = array<i32>} : memref<128x128xf32, #tpu.memory_space<vmem>>, vector<128x128xf32>,
    return
  }
  func.func @transform_0(%arg0: i32) -> (i32, i32) {
    %c0_i32 = arith.constant 0 : i32
    %c0_i32_0 = arith.constant 0 : i32
    return %arg0, %c0_i32 : i32, i32
  }
  func.func @transform_1(%arg0: i32) -> (i32, i32) {
    %c0_i32 = arith.constant 0 : i32
    %c0_i32_0 = arith.constant 0 : i32
    %c0_i32_1 = arith.constant 0 : i32
    return %c0_i32, %c0_i32_0 : i32, i32
  }
  func.func @transform_2(%arg0: i32) -> (i32, i32) {
    %c0_i32 = arith.constant 0 : i32
    %c0_i32_0 = arith.constant 0 : i32
    %c0_i32_1 = arith.constant 0 : i32
    return %c0_i32, %c0_i32_0 : i32, i32
  }
  func.func @transform_3(%arg0: i32) -> (i32, i32) {
    %c0_i32 = arith.constant 0 : i32
    %c0_i32_0 = arith.constant 0 : i32
    return %arg0, %c0_i32 : i32, i32
  }
  func.func @transform_4(%arg0: i32) -> (i32, i32) {
    %c0_i32 = arith.constant 0 : i32
    %c0_i32_0 = arith.constant 0 : i32
    return %arg0, %c0_i32 : i32, i32
  }
}

module attributes {stable_mosaic.version = 11 : i64} {
  func.func @_bin_conv_kernel(%arg0: i32, %arg1: memref<128x144xbf16, #tpu.memory_space<vmem>>, %arg2: memref<144x128xbf16, #tpu.memory_space<vmem>>, %arg3: memref<1x128xf32, #tpu.memory_space<vmem>>, %arg4: memref<128x128xf32, #tpu.memory_space<vmem>>) attributes {dimension_semantics = [#tpu.dimension_semantics<parallel>], iteration_bounds = array<i64: 1>, scalar_prefetch = 0 : i64, scratch_operands = 0 : i64, tpu.core_type = #tpu.core_type<tc>, window_params = [{transform_indices = @transform_0, window_bounds = array<i64: 128, 144>}, {pipeline_mode = #tpu.pipeline_mode<synchronous>, transform_indices = @transform_1, window_bounds = array<i64: 144, 128>}, {pipeline_mode = #tpu.pipeline_mode<synchronous>, transform_indices = @transform_2, window_bounds = array<i64: 1, 128>}, {transform_indices = @transform_3, window_bounds = array<i64: 128, 128>}]} {
    %c0 = arith.constant 0 : index
    %c0_0 = arith.constant 0 : index
    %0 = vector.load %arg1[%c0, %c0_0] : memref<128x144xbf16, #tpu.memory_space<vmem>>, vector<128x144xbf16>
    %c0_1 = arith.constant 0 : index
    %c0_2 = arith.constant 0 : index
    %1 = vector.load %arg2[%c0_1, %c0_2] : memref<144x128xbf16, #tpu.memory_space<vmem>>, vector<144x128xbf16>
    %cst = arith.constant dense<0.000000e+00> : vector<128x128xf32>
    %2 = tpu.matmul %0, %1, %cst {dimension_numbers = #tpu.dot_dimension_numbers<[1], [0], [0], [1], [0, 0, 1, 1], [], []>} : vector<128x144xbf16>, vector<144x128xbf16>, vector<128x128xf32> -> vector<128x128xf32>
    %c0_3 = arith.constant 0 : index
    %c0_4 = arith.constant 0 : index
    %3 = vector.load %arg3[%c0_3, %c0_4] : memref<1x128xf32, #tpu.memory_space<vmem>>, vector<1x128xf32>
    %4 = vector.broadcast %3 : vector<1x128xf32> to vector<128x128xf32>
    %5 = arith.mulf %2, %4 : vector<128x128xf32>
    %c0_5 = arith.constant 0 : index
    %c0_6 = arith.constant 0 : index
    %6 = vector.load %arg4[%c0_5, %c0_6] : memref<128x128xf32, #tpu.memory_space<vmem>>, vector<128x128xf32>
    tpu.vector_store %arg4[%c0_5, %c0_6], %5 {strides = array<i32>} : memref<128x128xf32, #tpu.memory_space<vmem>>, vector<128x128xf32>,
    return
  }
  func.func @transform_0(%arg0: i32) -> (i32, i32) {
    %c0_i32 = arith.constant 0 : i32
    %c0_i32_0 = arith.constant 0 : i32
    return %arg0, %c0_i32 : i32, i32
  }
  func.func @transform_1(%arg0: i32) -> (i32, i32) {
    %c0_i32 = arith.constant 0 : i32
    %c0_i32_0 = arith.constant 0 : i32
    %c0_i32_1 = arith.constant 0 : i32
    return %c0_i32, %c0_i32_0 : i32, i32
  }
  func.func @transform_2(%arg0: i32) -> (i32, i32) {
    %c0_i32 = arith.constant 0 : i32
    %c0_i32_0 = arith.constant 0 : i32
    %c0_i32_1 = arith.constant 0 : i32
    return %c0_i32, %c0_i32_0 : i32, i32
  }
  func.func @transform_3(%arg0: i32) -> (i32, i32) {
    %c0_i32 = arith.constant 0 : i32
    %c0_i32_0 = arith.constant 0 : i32
    return %arg0, %c0_i32 : i32, i32
  }
}

module attributes {stable_mosaic.version = 11 : i64} {
  func.func @_bin_conv_res_kernel(%arg0: i32, %arg1: memref<128x288xbf16, #tpu.memory_space<vmem>>, %arg2: memref<288x128xbf16, #tpu.memory_space<vmem>>, %arg3: memref<1x128xf32, #tpu.memory_space<vmem>>, %arg4: memref<128x128xf32, #tpu.memory_space<vmem>>, %arg5: memref<128x128xf32, #tpu.memory_space<vmem>>) attributes {dimension_semantics = [#tpu.dimension_semantics<parallel>], iteration_bounds = array<i64: 1>, scalar_prefetch = 0 : i64, scratch_operands = 0 : i64, tpu.core_type = #tpu.core_type<tc>, window_params = [{transform_indices = @transform_0, window_bounds = array<i64: 128, 288>}, {pipeline_mode = #tpu.pipeline_mode<synchronous>, transform_indices = @transform_1, window_bounds = array<i64: 288, 128>}, {pipeline_mode = #tpu.pipeline_mode<synchronous>, transform_indices = @transform_2, window_bounds = array<i64: 1, 128>}, {transform_indices = @transform_3, window_bounds = array<i64: 128, 128>}, {transform_indices = @transform_4, window_bounds = array<i64: 128, 128>}]} {
    %c0 = arith.constant 0 : index
    %c0_0 = arith.constant 0 : index
    %0 = vector.load %arg1[%c0, %c0_0] : memref<128x288xbf16, #tpu.memory_space<vmem>>, vector<128x288xbf16>
    %c0_1 = arith.constant 0 : index
    %c0_2 = arith.constant 0 : index
    %1 = vector.load %arg2[%c0_1, %c0_2] : memref<288x128xbf16, #tpu.memory_space<vmem>>, vector<288x128xbf16>
    %cst = arith.constant dense<0.000000e+00> : vector<128x128xf32>
    %2 = tpu.matmul %0, %1, %cst {dimension_numbers = #tpu.dot_dimension_numbers<[1], [0], [0], [1], [0, 0, 1, 1], [], []>} : vector<128x288xbf16>, vector<288x128xbf16>, vector<128x128xf32> -> vector<128x128xf32>
    %c0_3 = arith.constant 0 : index
    %c0_4 = arith.constant 0 : index
    %3 = vector.load %arg3[%c0_3, %c0_4] : memref<1x128xf32, #tpu.memory_space<vmem>>, vector<1x128xf32>
    %4 = vector.broadcast %3 : vector<1x128xf32> to vector<128x128xf32>
    %5 = arith.mulf %2, %4 : vector<128x128xf32>
    %c0_5 = arith.constant 0 : index
    %c0_6 = arith.constant 0 : index
    %6 = vector.load %arg4[%c0_5, %c0_6] : memref<128x128xf32, #tpu.memory_space<vmem>>, vector<128x128xf32>
    %7 = arith.addf %5, %6 : vector<128x128xf32>
    %cst_7 = arith.constant -1.000000e+00 : f32
    %cst_8 = arith.constant 1.000000e+00 : f32
    %8 = vector.broadcast %cst_7 : f32 to vector<128x128xf32>
    %9 = arith.maximumf %8, %7 : vector<128x128xf32>
    %10 = vector.broadcast %cst_8 : f32 to vector<128x128xf32>
    %11 = arith.minimumf %10, %9 : vector<128x128xf32>
    %c0_9 = arith.constant 0 : index
    %c0_10 = arith.constant 0 : index
    %12 = vector.load %arg5[%c0_9, %c0_10] : memref<128x128xf32, #tpu.memory_space<vmem>>, vector<128x128xf32>
    tpu.vector_store %arg5[%c0_9, %c0_10], %11 {strides = array<i32>} : memref<128x128xf32, #tpu.memory_space<vmem>>, vector<128x128xf32>,
    return
  }
  func.func @transform_0(%arg0: i32) -> (i32, i32) {
    %c0_i32 = arith.constant 0 : i32
    %c0_i32_0 = arith.constant 0 : i32
    return %arg0, %c0_i32 : i32, i32
  }
  func.func @transform_1(%arg0: i32) -> (i32, i32) {
    %c0_i32 = arith.constant 0 : i32
    %c0_i32_0 = arith.constant 0 : i32
    %c0_i32_1 = arith.constant 0 : i32
    return %c0_i32, %c0_i32_0 : i32, i32
  }
  func.func @transform_2(%arg0: i32) -> (i32, i32) {
    %c0_i32 = arith.constant 0 : i32
    %c0_i32_0 = arith.constant 0 : i32
    %c0_i32_1 = arith.constant 0 : i32
    return %c0_i32, %c0_i32_0 : i32, i32
  }
  func.func @transform_3(%arg0: i32) -> (i32, i32) {
    %c0_i32 = arith.constant 0 : i32
    %c0_i32_0 = arith.constant 0 : i32
    return %arg0, %c0_i32 : i32, i32
  }
  func.func @transform_4(%arg0: i32) -> (i32, i32) {
    %c0_i32 = arith.constant 0 : i32
    %c0_i32_0 = arith.constant 0 : i32
    return %arg0, %c0_i32 : i32, i32
  }
}

</mosaic_0001>

<bundles_post_ra>
// kernel: _lambda_.16
= control target key start
LH: loop header
LB: loop body
LE: loop exit
PB: predicated region body
PF: predicated region fallthrough
CT: control target
= control target key end

     0   :  { %vm119_vm0 = vcmask 1041408   ;;  %vm94_vm1 = vcmask 293888   ;;  %s543_s1 = inlined_call_operand.vmem [shape: bf16[36,128], index: 1, kind: input, shape index: {}]   ;;  %s544_s2 = inlined_call_operand.vmem [shape: f32[1,128], index: 2, kind: input, shape index: {}]   ;;  %s545_s0 = inlined_call_operand.vmem [shape: bf16[128,36], index: 0, kind: input, shape index: {}]   ;;  %s546_s3 = inlined_call_operand.vmem [shape: f32[128,128], index: 3, kind: input, shape index: {}]   ;;  %s547_s4 = inlined_call_operand.vmem [shape: f32[128,128], index: 4, kind: output, shape index: {}]  }
   0x1   :  { %v38_v0 = vld [vmem:[%s543_s1 + $0x10] sm:$0x3]  ;;  %v349_v4 = vld [vmem:[%s543_s1 + $0x8] sm:$0xff]  ;;  %v348_v5 = vld [vmem:[%s543_s1] sm:$0xff] }
   0x2   :  { %v88_v1 = vunpack.c.l.b16 %v38_v0  ;;  %v340_v6 = vld [vmem:[%s545_s0] sm:$0xff]  ;;  %v342_v7 = vld [vmem:[%s545_s0 + $0x10] sm:$0xff]  ;;  %v341_v10 = vld [vmem:[%s545_s0 + $0x8] sm:$0xff] }
   0x3   :  { %v344_v8 = vld [vmem:[%s545_s0 + $0x20] sm:$0xff]  ;;  %v346_v9 = vld [vmem:[%s545_s0 + $0x30] sm:$0xff]  ;;  %v343_v11 = vld [vmem:[%s545_s0 + $0x18] sm:$0xff] }
   0x4   :  { %v91_v2 = vpack.c.b16 %v88_v1, %v88_v1  ;;  %v345_v12 = vld [vmem:[%s545_s0 + $0x28] sm:$0xff]  ;;  %v347_v13 = vld [vmem:[%s545_s0 + $0x38] sm:$0xff]  ;;  %v429_v14 = vld [vmem:[%s544_s2] ss:$0 sm:$0xff] }
   0x5   :  { %v192_v16 = vld [vmem:[%s546_s3] sm:$0xff]  ;;  %v193_v32 = vld [vmem:[%s546_s3 + $0x8] sm:$0xff]  ;;  %v194_v52 = vld [vmem:[%s546_s3 + $0x10] sm:$0xff] }
   0x6   :  { %v121_v3 = vsel %vm119_vm0, %v91_v2, 0  ;;  %v196_v18 = vld [vmem:[%s546_s3 + $0x20] sm:$0xff]  ;;  %v197_v34 = vld [vmem:[%s546_s3 + $0x28] sm:$0xff]  ;;  %v198_v54 = vld [vmem:[%s546_s3 + $0x30] sm:$0xff] }
   0x7   :  { %128 = vmatpush.bf16.msra.mxu0 %v121_v3  ;;  %350 = vmatpush.bf16.msra.mxu1 %v121_v3  ;;  %v200_v26 = vld [vmem:[%s546_s3 + $0x40] sm:$0xff]  ;;  %v201_v46 = vld [vmem:[%s546_s3 + $0x48] sm:$0xff]  ;;  %v202_v2 = vld [vmem:[%s546_s3 + $0x50] sm:$0xff] }
   0x8   :  { %351 = vmatpush.bf16.msra.mxu2 %v121_v3  ;;  %352 = vmatpush.bf16.msra.mxu3 %v121_v3  ;;  %v204_v28 = vld [vmem:[%s546_s3 + $0x60] sm:$0xff]  ;;  %v205_v48 = vld [vmem:[%s546_s3 + $0x68] sm:$0xff] }
   0xb   :  { %129 = vmatpush.bf16.msra.mxu0 %v349_v4  ;;  %353 = vmatpush.bf16.msra.mxu1 %v349_v4 }
   0xc   :  { %354 = vmatpush.bf16.msra.mxu2 %v349_v4  ;;  %355 = vmatpush.bf16.msra.mxu3 %v349_v4  ;;  %v206_v4 = vld [vmem:[%s546_s3 + $0x70] sm:$0xff] }
   0xf   :  { %130 = vmatpush.bf16.msra.mxu0 %v348_v5  ;;  %356 = vmatpush.bf16.msra.mxu1 %v348_v5 }
  0x10   :  { %357 = vmatpush.bf16.msra.mxu2 %v348_v5  ;;  %358 = vmatpush.bf16.msra.mxu3 %v348_v5 }
  0x12   :  { %316 = vmatmul.msk.bf16.vlgmr.msra.gmra.mxu0 %vm94_vm1, %v340_v6  ;;  %318 = vmatmul.msk.bf16.vlgmr.msra.gmra.mxu1 %vm94_vm1, %v342_v7 }
  0x13   :  { %320 = vmatmul.msk.bf16.vlgmr.msra.gmra.mxu2 %vm94_vm1, %v344_v8  ;;  %322 = vmatmul.msk.bf16.vlgmr.msra.gmra.mxu3 %vm94_vm1, %v346_v9  ;;  %v195_v8 = vld [vmem:[%s546_s3 + $0x18] sm:$0xff] }
  0x22   :  { %317 = vmatmul.msk.bf16.gmra.mxu0 %vm94_vm1, %v341_v10  ;;  %319 = vmatmul.msk.bf16.gmra.mxu1 %vm94_vm1, %v343_v11  ;;  %v199_v10 = vld [vmem:[%s546_s3 + $0x38] sm:$0xff] }
  0x23   :  { %321 = vmatmul.msk.bf16.gmra.mxu2 %vm94_vm1, %v345_v12  ;;  %323 = vmatmul.msk.bf16.gmra.mxu3 %vm94_vm1, %v347_v13 }
  0x8f   :  { %v132_v15 = vpop.f32.mrf.mxu0  ;;  %v142_v17 = vpop.f32.mrf.mxu1 }
  0x90   :  { %v176_v19 = vmul.f32 %v429_v14, %v132_v15  ;;  %v180_v20 = vmul.f32 %v429_v14, %v142_v17 }
  0x92   :  { %v208_v21 = vadd.f32 %v192_v16, %v176_v19  ;;  %v212_v22 = vadd.f32 %v196_v18, %v180_v20 }
  0x94   :  { %v324_v23 = vclamps-f32 %v208_v21, 1.0  ;;  %v328_v24 = vclamps-f32 %v212_v22, 1.0 }
  0x96   :  { %256 = vst [vmem:[%s547_s4] sm:$0xff] %v324_v23  ;;  %v152_v25 = vpop.f32.mrf.mxu2  ;;  %v162_v27 = vpop.f32.mrf.mxu3  ;;  %v203_v23 = vld [vmem:[%s546_s3 + $0x58] sm:$0xff] }
  0x97   :  { %260 = vst [vmem:[%s547_s4 + $0x20] sm:$0xff] %v328_v24  ;;  %v184_v29 = vmul.f32 %v429_v14, %v152_v25  ;;  %v188_v30 = vmul.f32 %v429_v14, %v162_v27  ;;  %v134_v31 = vpop.f32.mrf.mxu0  ;;  %v144_v33 = vpop.f32.mrf.mxu1  ;;  %v207_v25 = vld [vmem:[%s546_s3 + $0x78] sm:$0xff] }
  0x98   :  { %v177_v35 = vmul.f32 %v429_v14, %v134_v31  ;;  %v181_v36 = vmul.f32 %v429_v14, %v144_v33 }
  0x99   :  { %v216_v37 = vadd.f32 %v200_v26, %v184_v29  ;;  %v220_v38 = vadd.f32 %v204_v28, %v188_v30 }
  0x9a   :  { %v209_v39 = vadd.f32 %v193_v32, %v177_v35  ;;  %v213_v40 = vadd.f32 %v197_v34, %v181_v36 }
  0x9b   :  { %v332_v41 = vclamps-f32 %v216_v37, 1.0  ;;  %v336_v42 = vclamps-f32 %v220_v38, 1.0 }
  0x9c   :  { %v325_v43 = vclamps-f32 %v209_v39, 1.0  ;;  %v329_v44 = vclamps-f32 %v213_v40, 1.0 }
  0x9d   :  { %264 = vst [vmem:[%s547_s4 + $0x40] sm:$0xff] %v332_v41 }
  0x9e   :  { %268 = vst [vmem:[%s547_s4 + $0x60] sm:$0xff] %v336_v42  ;;  %v154_v45 = vpop.f32.mrf.mxu2  ;;  %v164_v47 = vpop.f32.mrf.mxu3 }
  0x9f   :  { %257 = vst [vmem:[%s547_s4 + $0x8] sm:$0xff] %v325_v43  ;;  %v185_v49 = vmul.f32 %v429_v14, %v154_v45  ;;  %v189_v50 = vmul.f32 %v429_v14, %v164_v47  ;;  %v137_v51 = vpop.f32.mrf.mxu0  ;;  %v147_v53 = vpop.f32.mrf.mxu1 }
  0xa0   :  { %261 = vst [vmem:[%s547_s4 + $0x28] sm:$0xff] %v329_v44  ;;  %v178_v55 = vmul.f32 %v429_v14, %v137_v51  ;;  %v182_v56 = vmul.f32 %v429_v14, %v147_v53 }
  0xa1   :  { %v217_v57 = vadd.f32 %v201_v46, %v185_v49  ;;  %v221_v58 = vadd.f32 %v205_v48, %v189_v50 }
  0xa2   :  { %v210_v59 = vadd.f32 %v194_v52, %v178_v55  ;;  %v214_v60 = vadd.f32 %v198_v54, %v182_v56 }
  0xa3   :  { %v333_v61 = vclamps-f32 %v217_v57, 1.0  ;;  %v337_v62 = vclamps-f32 %v221_v58, 1.0 }
  0xa4   :  { %v326_v63 = vclamps-f32 %v210_v59, 1.0  ;;  %v330_v0 = vclamps-f32 %v214_v60, 1.0 }
  0xa5   :  { %265 = vst [vmem:[%s547_s4 + $0x48] sm:$0xff] %v333_v61 }
  0xa6   :  { %269 = vst [vmem:[%s547_s4 + $0x68] sm:$0xff] %v337_v62  ;;  %v157_v1 = vpop.f32.mrf.mxu2  ;;  %v167_v3 = vpop.f32.mrf.mxu3 }
  0xa7   :  { %258 = vst [vmem:[%s547_s4 + $0x10] sm:$0xff] %v326_v63  ;;  %v186_v5 = vmul.f32 %v429_v14, %v157_v1  ;;  %v190_v6 = vmul.f32 %v429_v14, %v167_v3  ;;  %v139_v7 = vpop.f32.mrf.mxu0  ;;  %v149_v9 = vpop.f32.mrf.mxu1 }
  0xa8   :  { %262 = vst [vmem:[%s547_s4 + $0x30] sm:$0xff] %v330_v0  ;;  %v179_v11 = vmul.f32 %v429_v14, %v139_v7  ;;  %v183_v12 = vmul.f32 %v429_v14, %v149_v9 }
  0xa9   :  { %v218_v13 = vadd.f32 %v202_v2, %v186_v5  ;;  %v222_v15 = vadd.f32 %v206_v4, %v190_v6 }
  0xaa   :  { %v211_v16 = vadd.f32 %v195_v8, %v179_v11  ;;  %v215_v17 = vadd.f32 %v199_v10, %v183_v12 }
  0xab   :  { %v334_v18 = vclamps-f32 %v218_v13, 1.0  ;;  %v338_v19 = vclamps-f32 %v222_v15, 1.0 }
  0xac   :  { %v327_v20 = vclamps-f32 %v211_v16, 1.0  ;;  %v331_v21 = vclamps-f32 %v215_v17, 1.0 }
  0xad   :  { %266 = vst [vmem:[%s547_s4 + $0x50] sm:$0xff] %v334_v18 }
  0xae   :  { %270 = vst [vmem:[%s547_s4 + $0x70] sm:$0xff] %v338_v19  ;;  %v159_v22 = vpop.f32.mrf.mxu2  ;;  %v169_v24 = vpop.f32.mrf.mxu3 }
  0xaf   :  { %259 = vst [vmem:[%s547_s4 + $0x18] sm:$0xff] %v327_v20  ;;  %v187_v26 = vmul.f32 %v429_v14, %v159_v22  ;;  %v191_v27 = vmul.f32 %v429_v14, %v169_v24 }
  0xb0   :  { %263 = vst [vmem:[%s547_s4 + $0x38] sm:$0xff] %v331_v21 }
  0xb1   :  { %v219_v28 = vadd.f32 %v203_v23, %v187_v26  ;;  %v223_v29 = vadd.f32 %v207_v25, %v191_v27 }
  0xb3   :  { %v335_v30 = vclamps-f32 %v219_v28, 1.0  ;;  %v339_v31 = vclamps-f32 %v223_v29, 1.0 }
  0xb5   :  { %267 = vst [vmem:[%s547_s4 + $0x58] sm:$0xff] %v335_v30 }
  0xb6   :  { %271 = vst [vmem:[%s547_s4 + $0x78] sm:$0xff] %v339_v31 }

// kernel: _lambda_.15
= control target key start
LH: loop header
LB: loop body
LE: loop exit
PB: predicated region body
PF: predicated region fallthrough
CT: control target
= control target key end

     0   :  { %vm116_vm0 = vcmask 1041408   ;;  %vm91_vm1 = vcmask 293888   ;;  %s389_s1 = inlined_call_operand.vmem [shape: bf16[36,128], index: 1, kind: input, shape index: {}]   ;;  %s390_s2 = inlined_call_operand.vmem [shape: f32[1,128], index: 2, kind: input, shape index: {}]   ;;  %s391_s0 = inlined_call_operand.vmem [shape: bf16[128,36], index: 0, kind: input, shape index: {}]   ;;  %s392_s3 = inlined_call_operand.vmem [shape: f32[128,128], index: 3, kind: output, shape index: {}]  }
   0x1   :  { %v35_v0 = vld [vmem:[%s389_s1 + $0x10] sm:$0x3]  ;;  %v266_v4 = vld [vmem:[%s389_s1 + $0x8] sm:$0xff]  ;;  %v265_v5 = vld [vmem:[%s389_s1] sm:$0xff] }
   0x2   :  { %v85_v1 = vunpack.c.l.b16 %v35_v0  ;;  %v257_v6 = vld [vmem:[%s391_s0] sm:$0xff]  ;;  %v259_v7 = vld [vmem:[%s391_s0 + $0x10] sm:$0xff]  ;;  %v258_v10 = vld [vmem:[%s391_s0 + $0x8] sm:$0xff] }
   0x3   :  { %v261_v8 = vld [vmem:[%s391_s0 + $0x20] sm:$0xff]  ;;  %v263_v9 = vld [vmem:[%s391_s0 + $0x30] sm:$0xff]  ;;  %v260_v11 = vld [vmem:[%s391_s0 + $0x18] sm:$0xff] }
   0x4   :  { %v88_v2 = vpack.c.b16 %v85_v1, %v85_v1  ;;  %v262_v12 = vld [vmem:[%s391_s0 + $0x28] sm:$0xff]  ;;  %v264_v13 = vld [vmem:[%s391_s0 + $0x38] sm:$0xff]  ;;  %v276_v14 = vld [vmem:[%s390_s2] ss:$0 sm:$0xff] }
   0x6   :  { %v118_v3 = vsel %vm116_vm0, %v88_v2, 0 }
   0x7   :  { %125 = vmatpush.bf16.msra.mxu0 %v118_v3  ;;  %267 = vmatpush.bf16.msra.mxu1 %v118_v3 }
   0x8   :  { %268 = vmatpush.bf16.msra.mxu2 %v118_v3  ;;  %269 = vmatpush.bf16.msra.mxu3 %v118_v3 }
   0xb   :  { %126 = vmatpush.bf16.msra.mxu0 %v266_v4  ;;  %270 = vmatpush.bf16.msra.mxu1 %v266_v4 }
   0xc   :  { %271 = vmatpush.bf16.msra.mxu2 %v266_v4  ;;  %272 = vmatpush.bf16.msra.mxu3 %v266_v4 }
   0xf   :  { %127 = vmatpush.bf16.msra.mxu0 %v265_v5  ;;  %273 = vmatpush.bf16.msra.mxu1 %v265_v5 }
  0x10   :  { %274 = vmatpush.bf16.msra.mxu2 %v265_v5  ;;  %275 = vmatpush.bf16.msra.mxu3 %v265_v5 }
  0x12   :  { %249 = vmatmul.msk.bf16.vlgmr.msra.gmra.mxu0 %vm91_vm1, %v257_v6  ;;  %251 = vmatmul.msk.bf16.vlgmr.msra.gmra.mxu1 %vm91_vm1, %v259_v7 }
  0x13   :  { %253 = vmatmul.msk.bf16.vlgmr.msra.gmra.mxu2 %vm91_vm1, %v261_v8  ;;  %255 = vmatmul.msk.bf16.vlgmr.msra.gmra.mxu3 %vm91_vm1, %v263_v9 }
  0x22   :  { %250 = vmatmul.msk.bf16.gmra.mxu0 %vm91_vm1, %v258_v10  ;;  %252 = vmatmul.msk.bf16.gmra.mxu1 %vm91_vm1, %v260_v11 }
  0x23   :  { %254 = vmatmul.msk.bf16.gmra.mxu2 %vm91_vm1, %v262_v12  ;;  %256 = vmatmul.msk.bf16.gmra.mxu3 %vm91_vm1, %v264_v13 }
  0x8f   :  { %v129_v15 = vpop.f32.mrf.mxu0  ;;  %v139_v16 = vpop.f32.mrf.mxu1 }
  0x90   :  { %v173_v17 = vmul.f32 %v276_v14, %v129_v15  ;;  %v177_v18 = vmul.f32 %v276_v14, %v139_v16 }
  0x92   :  { %189 = vst [vmem:[%s392_s3] sm:$0xff] %v173_v17 }
  0x93   :  { %193 = vst [vmem:[%s392_s3 + $0x20] sm:$0xff] %v177_v18 }
  0x96   :  { %v149_v19 = vpop.f32.mrf.mxu2  ;;  %v159_v20 = vpop.f32.mrf.mxu3 }
  0x97   :  { %v181_v21 = vmul.f32 %v276_v14, %v149_v19  ;;  %v185_v22 = vmul.f32 %v276_v14, %v159_v20  ;;  %v131_v23 = vpop.f32.mrf.mxu0  ;;  %v141_v24 = vpop.f32.mrf.mxu1 }
  0x98   :  { %v174_v25 = vmul.f32 %v276_v14, %v131_v23  ;;  %v178_v26 = vmul.f32 %v276_v14, %v141_v24 }
  0x99   :  { %197 = vst [vmem:[%s392_s3 + $0x40] sm:$0xff] %v181_v21 }
  0x9a   :  { %201 = vst [vmem:[%s392_s3 + $0x60] sm:$0xff] %v185_v22 }
  0x9b   :  { %190 = vst [vmem:[%s392_s3 + $0x8] sm:$0xff] %v174_v25 }
  0x9c   :  { %194 = vst [vmem:[%s392_s3 + $0x28] sm:$0xff] %v178_v26 }
  0x9e   :  { %v151_v27 = vpop.f32.mrf.mxu2  ;;  %v161_v28 = vpop.f32.mrf.mxu3 }
  0x9f   :  { %v182_v29 = vmul.f32 %v276_v14, %v151_v27  ;;  %v186_v30 = vmul.f32 %v276_v14, %v161_v28  ;;  %v134_v31 = vpop.f32.mrf.mxu0  ;;  %v144_v32 = vpop.f32.mrf.mxu1 }
  0xa0   :  { %v175_v33 = vmul.f32 %v276_v14, %v134_v31  ;;  %v179_v34 = vmul.f32 %v276_v14, %v144_v32 }
  0xa1   :  { %198 = vst [vmem:[%s392_s3 + $0x48] sm:$0xff] %v182_v29 }
  0xa2   :  { %202 = vst [vmem:[%s392_s3 + $0x68] sm:$0xff] %v186_v30 }
  0xa3   :  { %191 = vst [vmem:[%s392_s3 + $0x10] sm:$0xff] %v175_v33 }
  0xa4   :  { %195 = vst [vmem:[%s392_s3 + $0x30] sm:$0xff] %v179_v34 }
  0xa6   :  { %v154_v35 = vpop.f32.mrf.mxu2  ;;  %v164_v36 = vpop.f32.mrf.mxu3 }
  0xa7   :  { %v183_v37 = vmul.f32 %v276_v14, %v154_v35  ;;  %v187_v38 = vmul.f32 %v276_v14, %v164_v36  ;;  %v136_v39 = vpop.f32.mrf.mxu0  ;;  %v146_v40 = vpop.f32.mrf.mxu1 }
  0xa8   :  { %v176_v41 = vmul.f32 %v276_v14, %v136_v39  ;;  %v180_v42 = vmul.f32 %v276_v14, %v146_v40 }
  0xa9   :  { %199 = vst [vmem:[%s392_s3 + $0x50] sm:$0xff] %v183_v37 }
  0xaa   :  { %203 = vst [vmem:[%s392_s3 + $0x70] sm:$0xff] %v187_v38 }
  0xab   :  { %192 = vst [vmem:[%s392_s3 + $0x18] sm:$0xff] %v176_v41 }
  0xac   :  { %196 = vst [vmem:[%s392_s3 + $0x38] sm:$0xff] %v180_v42 }
  0xae   :  { %v156_v43 = vpop.f32.mrf.mxu2  ;;  %v166_v44 = vpop.f32.mrf.mxu3 }
  0xaf   :  { %v184_v45 = vmul.f32 %v276_v14, %v156_v43  ;;  %v188_v46 = vmul.f32 %v276_v14, %v166_v44 }
  0xb1   :  { %200 = vst [vmem:[%s392_s3 + $0x58] sm:$0xff] %v184_v45 }
  0xb2   :  { %204 = vst [vmem:[%s392_s3 + $0x78] sm:$0xff] %v188_v46 }

// kernel: _lambda_.17
= control target key start
LH: loop header
LB: loop body
LE: loop exit
PB: predicated region body
PF: predicated region fallthrough
CT: control target
= control target key end

     0   :  { %vm135_vm0 = vcmask 1043456   ;;  %vm110_vm1 = vcmask 588800   ;;  %s581_s1 = inlined_call_operand.vmem [shape: bf16[72,128], index: 1, kind: input, shape index: {}]   ;;  %s582_s2 = inlined_call_operand.vmem [shape: f32[1,128], index: 2, kind: input, shape index: {}]   ;;  %s583_s0 = inlined_call_operand.vmem [shape: bf16[128,72], index: 0, kind: input, shape index: {}]   ;;  %s584_s3 = inlined_call_operand.vmem [shape: f32[128,128], index: 3, kind: input, shape index: {}]   ;;  %s585_s4 = inlined_call_operand.vmem [shape: f32[128,128], index: 4, kind: output, shape index: {}]  }
   0x1   :  { %v42_v0 = vld [vmem:[%s581_s1 + $0x20] sm:$0xf]  ;;  %v375_v4 = vld [vmem:[%s581_s1 + $0x18] sm:$0xff]  ;;  %v374_v5 = vld [vmem:[%s581_s1 + $0x10] sm:$0xff] }
   0x2   :  { %v100_v1 = vunpack.c.l.b16 %v42_v0  ;;  %v373_v6 = vld [vmem:[%s581_s1 + $0x8] sm:$0xff]  ;;  %v372_v7 = vld [vmem:[%s581_s1] sm:$0xff]  ;;  %v366_v9 = vld [vmem:[%s583_s0 + $0x10] sm:$0xff] }
   0x3   :  { %v364_v8 = vld [vmem:[%s583_s0] sm:$0xff]  ;;  %v370_v11 = vld [vmem:[%s583_s0 + $0x30] sm:$0xff]  ;;  %v365_v12 = vld [vmem:[%s583_s0 + $0x8] sm:$0xff] }
   0x4   :  { %v105_v2 = vpack.c.b16 %v100_v1, %v100_v1  ;;  %v368_v10 = vld [vmem:[%s583_s0 + $0x20] sm:$0xff]  ;;  %v367_v13 = vld [vmem:[%s583_s0 + $0x18] sm:$0xff]  ;;  %v369_v14 = vld [vmem:[%s583_s0 + $0x28] sm:$0xff] }
   0x5   :  { %v371_v15 = vld [vmem:[%s583_s0 + $0x38] sm:$0xff]  ;;  %v467_v16 = vld [vmem:[%s582_s2] ss:$0 sm:$0xff]  ;;  %v209_v34 = vld [vmem:[%s584_s3 + $0x8] sm:$0xff] }
   0x6   :  { %v137_v3 = vsel %vm135_vm0, %v105_v2, 0  ;;  %v208_v18 = vld [vmem:[%s584_s3] sm:$0xff]  ;;  %v213_v36 = vld [vmem:[%s584_s3 + $0x28] sm:$0xff]  ;;  %v210_v54 = vld [vmem:[%s584_s3 + $0x10] sm:$0xff] }
   0x7   :  { %142 = vmatpush.bf16.msra.mxu0 %v137_v3  ;;  %376 = vmatpush.bf16.msra.mxu1 %v137_v3  ;;  %v212_v20 = vld [vmem:[%s584_s3 + $0x20] sm:$0xff]  ;;  %v217_v48 = vld [vmem:[%s584_s3 + $0x48] sm:$0xff]  ;;  %v214_v56 = vld [vmem:[%s584_s3 + $0x30] sm:$0xff] }
   0x8   :  { %377 = vmatpush.bf16.msra.mxu2 %v137_v3  ;;  %378 = vmatpush.bf16.msra.mxu3 %v137_v3  ;;  %v216_v28 = vld [vmem:[%s584_s3 + $0x40] sm:$0xff]  ;;  %v221_v50 = vld [vmem:[%s584_s3 + $0x68] sm:$0xff] }
   0x9   :  { %v220_v30 = vld [vmem:[%s584_s3 + $0x60] sm:$0xff] }
   0xb   :  { %143 = vmatpush.bf16.msra.mxu0 %v375_v4  ;;  %379 = vmatpush.bf16.msra.mxu1 %v375_v4 }
   0xc   :  { %380 = vmatpush.bf16.msra.mxu2 %v375_v4  ;;  %381 = vmatpush.bf16.msra.mxu3 %v375_v4  ;;  %v218_v4 = vld [vmem:[%s584_s3 + $0x50] sm:$0xff] }
   0xf   :  { %144 = vmatpush.bf16.msra.mxu0 %v374_v5  ;;  %382 = vmatpush.bf16.msra.mxu1 %v374_v5 }
  0x10   :  { %383 = vmatpush.bf16.msra.mxu2 %v374_v5  ;;  %384 = vmatpush.bf16.msra.mxu3 %v374_v5 }
  0x13   :  { %145 = vmatpush.bf16.msra.mxu0 %v373_v6  ;;  %385 = vmatpush.bf16.msra.mxu1 %v373_v6 }
  0x14   :  { %386 = vmatpush.bf16.msra.mxu2 %v373_v6  ;;  %387 = vmatpush.bf16.msra.mxu3 %v373_v6  ;;  %v222_v6 = vld [vmem:[%s584_s3 + $0x70] sm:$0xff] }
  0x17   :  { %146 = vmatpush.bf16.msra.mxu0 %v372_v7  ;;  %388 = vmatpush.bf16.msra.mxu1 %v372_v7 }
  0x18   :  { %389 = vmatpush.bf16.msra.mxu2 %v372_v7  ;;  %390 = vmatpush.bf16.msra.mxu3 %v372_v7 }
  0x1a   :  { %340 = vmatmul.msk.bf16.vlgmr.msra.gmra.mxu0 %vm110_vm1, %v364_v8  ;;  %342 = vmatmul.msk.bf16.vlgmr.msra.gmra.mxu1 %vm110_vm1, %v366_v9 }
  0x1b   :  { %344 = vmatmul.msk.bf16.vlgmr.msra.gmra.mxu2 %vm110_vm1, %v368_v10  ;;  %346 = vmatmul.msk.bf16.vlgmr.msra.gmra.mxu3 %vm110_vm1, %v370_v11  ;;  %v211_v10 = vld [vmem:[%s584_s3 + $0x18] sm:$0xff] }
  0x2a   :  { %341 = vmatmul.msk.bf16.gmra.mxu0 %vm110_vm1, %v365_v12  ;;  %343 = vmatmul.msk.bf16.gmra.mxu1 %vm110_vm1, %v367_v13  ;;  %v215_v12 = vld [vmem:[%s584_s3 + $0x38] sm:$0xff] }
  0x2b   :  { %345 = vmatmul.msk.bf16.gmra.mxu2 %vm110_vm1, %v369_v14  ;;  %347 = vmatmul.msk.bf16.gmra.mxu3 %vm110_vm1, %v371_v15 }
  0x97   :  { %v148_v17 = vpop.f32.mrf.mxu0  ;;  %v158_v19 = vpop.f32.mrf.mxu1 }
  0x98   :  { %v192_v21 = vmul.f32 %v467_v16, %v148_v17  ;;  %v196_v22 = vmul.f32 %v467_v16, %v158_v19 }
  0x9a   :  { %v224_v23 = vadd.f32 %v208_v18, %v192_v21  ;;  %v228_v24 = vadd.f32 %v212_v20, %v196_v22 }
  0x9c   :  { %v348_v25 = vclamps-f32 %v224_v23, 1.0  ;;  %v352_v26 = vclamps-f32 %v228_v24, 1.0 }
  0x9e   :  { %272 = vst [vmem:[%s585_s4] sm:$0xff] %v348_v25  ;;  %v168_v27 = vpop.f32.mrf.mxu2  ;;  %v178_v29 = vpop.f32.mrf.mxu3  ;;  %v219_v25 = vld [vmem:[%s584_s3 + $0x58] sm:$0xff] }
  0x9f   :  { %276 = vst [vmem:[%s585_s4 + $0x20] sm:$0xff] %v352_v26  ;;  %v200_v31 = vmul.f32 %v467_v16, %v168_v27  ;;  %v204_v32 = vmul.f32 %v467_v16, %v178_v29  ;;  %v150_v33 = vpop.f32.mrf.mxu0  ;;  %v160_v35 = vpop.f32.mrf.mxu1  ;;  %v223_v27 = vld [vmem:[%s584_s3 + $0x78] sm:$0xff] }
  0xa0   :  { %v193_v37 = vmul.f32 %v467_v16, %v150_v33  ;;  %v197_v38 = vmul.f32 %v467_v16, %v160_v35 }
  0xa1   :  { %v232_v39 = vadd.f32 %v216_v28, %v200_v31  ;;  %v236_v40 = vadd.f32 %v220_v30, %v204_v32 }
  0xa2   :  { %v225_v41 = vadd.f32 %v209_v34, %v193_v37  ;;  %v229_v42 = vadd.f32 %v213_v36, %v197_v38 }
  0xa3   :  { %v356_v43 = vclamps-f32 %v232_v39, 1.0  ;;  %v360_v44 = vclamps-f32 %v236_v40, 1.0 }
  0xa4   :  { %v349_v45 = vclamps-f32 %v225_v41, 1.0  ;;  %v353_v46 = vclamps-f32 %v229_v42, 1.0 }
  0xa5   :  { %280 = vst [vmem:[%s585_s4 + $0x40] sm:$0xff] %v356_v43 }
  0xa6   :  { %284 = vst [vmem:[%s585_s4 + $0x60] sm:$0xff] %v360_v44  ;;  %v170_v47 = vpop.f32.mrf.mxu2  ;;  %v180_v49 = vpop.f32.mrf.mxu3 }
  0xa7   :  { %273 = vst [vmem:[%s585_s4 + $0x8] sm:$0xff] %v349_v45  ;;  %v201_v51 = vmul.f32 %v467_v16, %v170_v47  ;;  %v205_v52 = vmul.f32 %v467_v16, %v180_v49  ;;  %v153_v53 = vpop.f32.mrf.mxu0  ;;  %v163_v55 = vpop.f32.mrf.mxu1 }
  0xa8   :  { %277 = vst [vmem:[%s585_s4 + $0x28] sm:$0xff] %v353_v46  ;;  %v194_v57 = vmul.f32 %v467_v16, %v153_v53  ;;  %v198_v58 = vmul.f32 %v467_v16, %v163_v55 }
  0xa9   :  { %v233_v59 = vadd.f32 %v217_v48, %v201_v51  ;;  %v237_v60 = vadd.f32 %v221_v50, %v205_v52 }
  0xaa   :  { %v226_v61 = vadd.f32 %v210_v54, %v194_v57  ;;  %v230_v62 = vadd.f32 %v214_v56, %v198_v58 }
  0xab   :  { %v357_v63 = vclamps-f32 %v233_v59, 1.0  ;;  %v361_v0 = vclamps-f32 %v237_v60, 1.0 }
  0xac   :  { %v350_v1 = vclamps-f32 %v226_v61, 1.0  ;;  %v354_v2 = vclamps-f32 %v230_v62, 1.0 }
  0xad   :  { %281 = vst [vmem:[%s585_s4 + $0x48] sm:$0xff] %v357_v63 }
  0xae   :  { %285 = vst [vmem:[%s585_s4 + $0x68] sm:$0xff] %v361_v0  ;;  %v173_v3 = vpop.f32.mrf.mxu2  ;;  %v183_v5 = vpop.f32.mrf.mxu3 }
  0xaf   :  { %274 = vst [vmem:[%s585_s4 + $0x10] sm:$0xff] %v350_v1  ;;  %v202_v7 = vmul.f32 %v467_v16, %v173_v3  ;;  %v206_v8 = vmul.f32 %v467_v16, %v183_v5  ;;  %v155_v9 = vpop.f32.mrf.mxu0  ;;  %v165_v11 = vpop.f32.mrf.mxu1 }
  0xb0   :  { %278 = vst [vmem:[%s585_s4 + $0x30] sm:$0xff] %v354_v2  ;;  %v195_v13 = vmul.f32 %v467_v16, %v155_v9  ;;  %v199_v14 = vmul.f32 %v467_v16, %v165_v11 }
  0xb1   :  { %v234_v15 = vadd.f32 %v218_v4, %v202_v7  ;;  %v238_v17 = vadd.f32 %v222_v6, %v206_v8 }
  0xb2   :  { %v227_v18 = vadd.f32 %v211_v10, %v195_v13  ;;  %v231_v19 = vadd.f32 %v215_v12, %v199_v14 }
  0xb3   :  { %v358_v20 = vclamps-f32 %v234_v15, 1.0  ;;  %v362_v21 = vclamps-f32 %v238_v17, 1.0 }
  0xb4   :  { %v351_v22 = vclamps-f32 %v227_v18, 1.0  ;;  %v355_v23 = vclamps-f32 %v231_v19, 1.0 }
  0xb5   :  { %282 = vst [vmem:[%s585_s4 + $0x50] sm:$0xff] %v358_v20 }
  0xb6   :  { %286 = vst [vmem:[%s585_s4 + $0x70] sm:$0xff] %v362_v21  ;;  %v175_v24 = vpop.f32.mrf.mxu2  ;;  %v185_v26 = vpop.f32.mrf.mxu3 }
  0xb7   :  { %275 = vst [vmem:[%s585_s4 + $0x18] sm:$0xff] %v351_v22  ;;  %v203_v28 = vmul.f32 %v467_v16, %v175_v24  ;;  %v207_v29 = vmul.f32 %v467_v16, %v185_v26 }
  0xb8   :  { %279 = vst [vmem:[%s585_s4 + $0x38] sm:$0xff] %v355_v23 }
  0xb9   :  { %v235_v30 = vadd.f32 %v219_v25, %v203_v28  ;;  %v239_v31 = vadd.f32 %v223_v27, %v207_v29 }
  0xbb   :  { %v359_v32 = vclamps-f32 %v235_v30, 1.0  ;;  %v363_v33 = vclamps-f32 %v239_v31, 1.0 }
  0xbd   :  { %283 = vst [vmem:[%s585_s4 + $0x58] sm:$0xff] %v359_v32 }
  0xbe   :  { %287 = vst [vmem:[%s585_s4 + $0x78] sm:$0xff] %v363_v33 }

// kernel: _lambda_.20
= control target key start
LH: loop header
LB: loop body
LE: loop exit
PB: predicated region body
PF: predicated region fallthrough
CT: control target
= control target key end

     0   :  { %vm132_vm0 = vcmask 1043456   ;;  %vm107_vm1 = vcmask 588800   ;;  %s427_s1 = inlined_call_operand.vmem [shape: bf16[72,128], index: 1, kind: input, shape index: {}]   ;;  %s428_s2 = inlined_call_operand.vmem [shape: f32[1,128], index: 2, kind: input, shape index: {}]   ;;  %s429_s0 = inlined_call_operand.vmem [shape: bf16[128,72], index: 0, kind: input, shape index: {}]   ;;  %s430_s3 = inlined_call_operand.vmem [shape: f32[128,128], index: 3, kind: output, shape index: {}]  }
   0x1   :  { %v39_v0 = vld [vmem:[%s427_s1 + $0x20] sm:$0xf]  ;;  %v292_v4 = vld [vmem:[%s427_s1 + $0x18] sm:$0xff]  ;;  %v291_v5 = vld [vmem:[%s427_s1 + $0x10] sm:$0xff] }
   0x2   :  { %v97_v1 = vunpack.c.l.b16 %v39_v0  ;;  %v290_v6 = vld [vmem:[%s427_s1 + $0x8] sm:$0xff]  ;;  %v289_v7 = vld [vmem:[%s427_s1] sm:$0xff]  ;;  %v283_v9 = vld [vmem:[%s429_s0 + $0x10] sm:$0xff] }
   0x3   :  { %v281_v8 = vld [vmem:[%s429_s0] sm:$0xff]  ;;  %v287_v11 = vld [vmem:[%s429_s0 + $0x30] sm:$0xff]  ;;  %v282_v12 = vld [vmem:[%s429_s0 + $0x8] sm:$0xff] }
   0x4   :  { %v102_v2 = vpack.c.b16 %v97_v1, %v97_v1  ;;  %v285_v10 = vld [vmem:[%s429_s0 + $0x20] sm:$0xff]  ;;  %v284_v13 = vld [vmem:[%s429_s0 + $0x18] sm:$0xff]  ;;  %v286_v14 = vld [vmem:[%s429_s0 + $0x28] sm:$0xff] }
   0x5   :  { %v288_v15 = vld [vmem:[%s429_s0 + $0x38] sm:$0xff]  ;;  %v308_v16 = vld [vmem:[%s428_s2] ss:$0 sm:$0xff] }
   0x6   :  { %v134_v3 = vsel %vm132_vm0, %v102_v2, 0 }
   0x7   :  { %139 = vmatpush.bf16.msra.mxu0 %v134_v3  ;;  %293 = vmatpush.bf16.msra.mxu1 %v134_v3 }
   0x8   :  { %294 = vmatpush.bf16.msra.mxu2 %v134_v3  ;;  %295 = vmatpush.bf16.msra.mxu3 %v134_v3 }
   0xb   :  { %140 = vmatpush.bf16.msra.mxu0 %v292_v4  ;;  %296 = vmatpush.bf16.msra.mxu1 %v292_v4 }
   0xc   :  { %297 = vmatpush.bf16.msra.mxu2 %v292_v4  ;;  %298 = vmatpush.bf16.msra.mxu3 %v292_v4 }
   0xf   :  { %141 = vmatpush.bf16.msra.mxu0 %v291_v5  ;;  %299 = vmatpush.bf16.msra.mxu1 %v291_v5 }
  0x10   :  { %300 = vmatpush.bf16.msra.mxu2 %v291_v5  ;;  %301 = vmatpush.bf16.msra.mxu3 %v291_v5 }
  0x13   :  { %142 = vmatpush.bf16.msra.mxu0 %v290_v6  ;;  %302 = vmatpush.bf16.msra.mxu1 %v290_v6 }
  0x14   :  { %303 = vmatpush.bf16.msra.mxu2 %v290_v6  ;;  %304 = vmatpush.bf16.msra.mxu3 %v290_v6 }
  0x17   :  { %143 = vmatpush.bf16.msra.mxu0 %v289_v7  ;;  %305 = vmatpush.bf16.msra.mxu1 %v289_v7 }
  0x18   :  { %306 = vmatpush.bf16.msra.mxu2 %v289_v7  ;;  %307 = vmatpush.bf16.msra.mxu3 %v289_v7 }
  0x1a   :  { %273 = vmatmul.msk.bf16.vlgmr.msra.gmra.mxu0 %vm107_vm1, %v281_v8  ;;  %275 = vmatmul.msk.bf16.vlgmr.msra.gmra.mxu1 %vm107_vm1, %v283_v9 }
  0x1b   :  { %277 = vmatmul.msk.bf16.vlgmr.msra.gmra.mxu2 %vm107_vm1, %v285_v10  ;;  %279 = vmatmul.msk.bf16.vlgmr.msra.gmra.mxu3 %vm107_vm1, %v287_v11 }
  0x2a   :  { %274 = vmatmul.msk.bf16.gmra.mxu0 %vm107_vm1, %v282_v12  ;;  %276 = vmatmul.msk.bf16.gmra.mxu1 %vm107_vm1, %v284_v13 }
  0x2b   :  { %278 = vmatmul.msk.bf16.gmra.mxu2 %vm107_vm1, %v286_v14  ;;  %280 = vmatmul.msk.bf16.gmra.mxu3 %vm107_vm1, %v288_v15 }
  0x97   :  { %v145_v17 = vpop.f32.mrf.mxu0  ;;  %v155_v18 = vpop.f32.mrf.mxu1 }
  0x98   :  { %v189_v19 = vmul.f32 %v308_v16, %v145_v17  ;;  %v193_v20 = vmul.f32 %v308_v16, %v155_v18 }
  0x9a   :  { %205 = vst [vmem:[%s430_s3] sm:$0xff] %v189_v19 }
  0x9b   :  { %209 = vst [vmem:[%s430_s3 + $0x20] sm:$0xff] %v193_v20 }
  0x9e   :  { %v165_v21 = vpop.f32.mrf.mxu2  ;;  %v175_v22 = vpop.f32.mrf.mxu3 }
  0x9f   :  { %v197_v23 = vmul.f32 %v308_v16, %v165_v21  ;;  %v201_v24 = vmul.f32 %v308_v16, %v175_v22  ;;  %v147_v25 = vpop.f32.mrf.mxu0  ;;  %v157_v26 = vpop.f32.mrf.mxu1 }
  0xa0   :  { %v190_v27 = vmul.f32 %v308_v16, %v147_v25  ;;  %v194_v28 = vmul.f32 %v308_v16, %v157_v26 }
  0xa1   :  { %213 = vst [vmem:[%s430_s3 + $0x40] sm:$0xff] %v197_v23 }
  0xa2   :  { %217 = vst [vmem:[%s430_s3 + $0x60] sm:$0xff] %v201_v24 }
  0xa3   :  { %206 = vst [vmem:[%s430_s3 + $0x8] sm:$0xff] %v190_v27 }
  0xa4   :  { %210 = vst [vmem:[%s430_s3 + $0x28] sm:$0xff] %v194_v28 }
  0xa6   :  { %v167_v29 = vpop.f32.mrf.mxu2  ;;  %v177_v30 = vpop.f32.mrf.mxu3 }
  0xa7   :  { %v198_v31 = vmul.f32 %v308_v16, %v167_v29  ;;  %v202_v32 = vmul.f32 %v308_v16, %v177_v30  ;;  %v150_v33 = vpop.f32.mrf.mxu0  ;;  %v160_v34 = vpop.f32.mrf.mxu1 }
  0xa8   :  { %v191_v35 = vmul.f32 %v308_v16, %v150_v33  ;;  %v195_v36 = vmul.f32 %v308_v16, %v160_v34 }
  0xa9   :  { %214 = vst [vmem:[%s430_s3 + $0x48] sm:$0xff] %v198_v31 }
  0xaa   :  { %218 = vst [vmem:[%s430_s3 + $0x68] sm:$0xff] %v202_v32 }
  0xab   :  { %207 = vst [vmem:[%s430_s3 + $0x10] sm:$0xff] %v191_v35 }
  0xac   :  { %211 = vst [vmem:[%s430_s3 + $0x30] sm:$0xff] %v195_v36 }
  0xae   :  { %v170_v37 = vpop.f32.mrf.mxu2  ;;  %v180_v38 = vpop.f32.mrf.mxu3 }
  0xaf   :  { %v199_v39 = vmul.f32 %v308_v16, %v170_v37  ;;  %v203_v40 = vmul.f32 %v308_v16, %v180_v38  ;;  %v152_v41 = vpop.f32.mrf.mxu0  ;;  %v162_v42 = vpop.f32.mrf.mxu1 }
  0xb0   :  { %v192_v43 = vmul.f32 %v308_v16, %v152_v41  ;;  %v196_v44 = vmul.f32 %v308_v16, %v162_v42 }
  0xb1   :  { %215 = vst [vmem:[%s430_s3 + $0x50] sm:$0xff] %v199_v39 }
  0xb2   :  { %219 = vst [vmem:[%s430_s3 + $0x70] sm:$0xff] %v203_v40 }
  0xb3   :  { %208 = vst [vmem:[%s430_s3 + $0x18] sm:$0xff] %v192_v43 }
  0xb4   :  { %212 = vst [vmem:[%s430_s3 + $0x38] sm:$0xff] %v196_v44 }
  0xb6   :  { %v172_v45 = vpop.f32.mrf.mxu2  ;;  %v182_v46 = vpop.f32.mrf.mxu3 }
  0xb7   :  { %v200_v47 = vmul.f32 %v308_v16, %v172_v45  ;;  %v204_v48 = vmul.f32 %v308_v16, %v182_v46 }
  0xb9   :  { %216 = vst [vmem:[%s430_s3 + $0x58] sm:$0xff] %v200_v47 }
  0xba   :  { %220 = vst [vmem:[%s430_s3 + $0x78] sm:$0xff] %v204_v48 }

// kernel: _lambda_.22
= control target key start
LH: loop header
LB: loop body
LE: loop exit
PB: predicated region body
PF: predicated region fallthrough
CT: control target
= control target key end

     0   :  { %vm178_vm0 = vcmask 130048   ;;  %s843_s1 = inlined_call_operand.vmem [shape: bf16[144,128], index: 1, kind: input, shape index: {}]   ;;  %s844_s0 = inlined_call_operand.vmem [shape: bf16[128,144], index: 0, kind: input, shape index: {}]   ;;  %s845_s2 = inlined_call_operand.vmem [shape: f32[1,128], index: 2, kind: input, shape index: {}]   ;;  %s846_s3 = inlined_call_operand.vmem [shape: f32[128,128], index: 3, kind: input, shape index: {}]   ;;  %s847_s4 = inlined_call_operand.vmem [shape: f32[128,128], index: 4, kind: output, shape index: {}]  }
   0x1   :  { %v552_v0 = vld [vmem:[%s843_s1 + $0x38] sm:$0xff]  ;;  %v553_v1 = vld [vmem:[%s843_s1 + $0x40] sm:$0xff]  ;;  %v409_v3 = vld [vmem:[%s844_s0 + $0x8] sm:$0xf0] }
   0x2   :  { %v529_v2 = vld [vmem:[%s844_s0 + $0x4] sm:$0xf]  ;;  %203 = vmatpush.bf16.msra.mxu0 %v552_v0  ;;  %554 = vmatpush.bf16.msra.mxu2 %v552_v0  ;;  %v551_v5 = vld [vmem:[%s843_s1 + $0x30] sm:$0xff]  ;;  %v550_v6 = vld [vmem:[%s843_s1 + $0x28] sm:$0xff] }
   0x3   :  { %v412_v4 = vor.u32 %v529_v2, %v409_v3  ;;  %259 = vmatpush.bf16.msra.mxu1 %v553_v1  ;;  %562 = vmatpush.bf16.msra.mxu3 %v553_v1  ;;  %v539_v7 = vld [vmem:[%s844_s0 + $0x54] sm:$0xf]  ;;  %v449_v8 = vld [vmem:[%s844_s0 + $0x58] sm:$0xf0]  ;;  %v549_v10 = vld [vmem:[%s843_s1 + $0x20] sm:$0xff] }
   0x4   :  { %v452_v9 = vor.u32 %v539_v7, %v449_v8  ;;  %v548_v11 = vld [vmem:[%s843_s1 + $0x18] sm:$0xff]  ;;  %v531_v12 = vld [vmem:[%s844_s0 + $0x14] sm:$0xf]  ;;  %v546_v16 = vld [vmem:[%s843_s1 + $0x8] sm:$0xff] }
   0x5   :  { %v417_v13 = vld [vmem:[%s844_s0 + $0x18] sm:$0xf0]  ;;  %v547_v15 = vld [vmem:[%s843_s1 + $0x10] sm:$0xff]  ;;  %v541_v17 = vld [vmem:[%s844_s0 + $0x64] sm:$0xf] }
   0x6   :  { %505 = vmatmul.msk.bf16.vlgmr.msra.gmra.mxu1 %vm178_vm0, %v412_v4  ;;  %204 = vmatpush.bf16.msra.mxu0 %v551_v5  ;;  %v420_v14 = vor.u32 %v531_v12, %v417_v13  ;;  %v457_v18 = vld [vmem:[%s844_s0 + $0x68] sm:$0xf0]  ;;  %v545_v20 = vld [vmem:[%s843_s1] sm:$0xff]  ;;  %v530_v22 = vld [vmem:[%s844_s0 + $0x4] sm:$0xf0] }
   0x7   :  { %555 = vmatpush.bf16.msra.mxu2 %v551_v5  ;;  %510 = vmatmul.msk.bf16.vlgmr.msra.gmra.mxu3 %vm178_vm0, %v452_v9  ;;  %v460_v19 = vor.u32 %v541_v17, %v457_v18  ;;  %v407_v21 = vld [vmem:[%s844_s0] sm:$0xf]  ;;  %v538_v24 = vld [vmem:[%s844_s0 + $0x44] sm:$0xf0]  ;;  %v533_v27 = vld [vmem:[%s844_s0 + $0x24] sm:$0xf] }
   0x8   :  { %v439_v23 = vld [vmem:[%s844_s0 + $0x40] sm:$0xf]  ;;  %v408_v25 = vor.u32 %v530_v22, %v407_v21  ;;  %v425_v28 = vld [vmem:[%s844_s0 + $0x28] sm:$0xf0]  ;;  %v543_v30 = vld [vmem:[%s844_s0 + $0x74] sm:$0xf] }
   0x9   :  { %v440_v26 = vor.u32 %v538_v24, %v439_v23  ;;  %v428_v29 = vor.u32 %v533_v27, %v425_v28  ;;  %v465_v31 = vld [vmem:[%s844_s0 + $0x78] sm:$0xf0]  ;;  %v415_v33 = vld [vmem:[%s844_s0 + $0x10] sm:$0xf]  ;;  %v532_v34 = vld [vmem:[%s844_s0 + $0x14] sm:$0xf0] }
   0xa   :  { %205 = vmatpush.bf16.msra.mxu0 %v550_v6  ;;  %v468_v32 = vor.u32 %v543_v30, %v465_v31  ;;  %v447_v35 = vld [vmem:[%s844_s0 + $0x50] sm:$0xf]  ;;  %v540_v36 = vld [vmem:[%s844_s0 + $0x54] sm:$0xf0]  ;;  %v416_v37 = vor.u32 %v532_v34, %v415_v33  ;;  %v535_v39 = vld [vmem:[%s844_s0 + $0x34] sm:$0xf] }
   0xb   :  { %556 = vmatpush.bf16.msra.mxu2 %v550_v6  ;;  %v448_v38 = vor.u32 %v540_v36, %v447_v35  ;;  %v433_v40 = vld [vmem:[%s844_s0 + $0x38] sm:$0xf0]  ;;  %v423_v42 = vld [vmem:[%s844_s0 + $0x20] sm:$0xf]  ;;  %v534_v43 = vld [vmem:[%s844_s0 + $0x24] sm:$0xf0] }
   0xc   :  { %v436_v41 = vor.u32 %v535_v39, %v433_v40  ;;  %v455_v44 = vld [vmem:[%s844_s0 + $0x60] sm:$0xf]  ;;  %v542_v45 = vld [vmem:[%s844_s0 + $0x64] sm:$0xf0]  ;;  %v424_v46 = vor.u32 %v534_v43, %v423_v42  ;;  %v537_v48 = vld [vmem:[%s844_s0 + $0x44] sm:$0xf] }
   0xd   :  { %v456_v47 = vor.u32 %v542_v45, %v455_v44  ;;  %v441_v49 = vld [vmem:[%s844_s0 + $0x48] sm:$0xf0]  ;;  %v431_v51 = vld [vmem:[%s844_s0 + $0x30] sm:$0xf]  ;;  %v536_v52 = vld [vmem:[%s844_s0 + $0x34] sm:$0xf0] }
   0xe   :  { %206 = vmatpush.bf16.msra.mxu0 %v549_v10  ;;  %v444_v50 = vor.u32 %v537_v48, %v441_v49  ;;  %v463_v53 = vld [vmem:[%s844_s0 + $0x70] sm:$0xf]  ;;  %v544_v54 = vld [vmem:[%s844_s0 + $0x74] sm:$0xf0]  ;;  %v432_v55 = vor.u32 %v536_v52, %v431_v51  ;;  %v723_v61 = vld [vmem:[%s845_s2] ss:$0 sm:$0xff] }
   0xf   :  { %557 = vmatpush.bf16.msra.mxu2 %v549_v10  ;;  %v464_v56 = vor.u32 %v544_v54, %v463_v53  ;;  %v321_v0 = vld [vmem:[%s846_s3] sm:$0xff]  ;;  %v322_v8 = vld [vmem:[%s846_s3 + $0x8] sm:$0xff]  ;;  %v323_v17 = vld [vmem:[%s846_s3 + $0x10] sm:$0xff] }
  0x10   :  { %v332_v39 = vld [vmem:[%s846_s3 + $0x58] sm:$0xff]  ;;  %v325_v43 = vld [vmem:[%s846_s3 + $0x20] sm:$0xff] }
  0x11   :  { %v329_v51 = vld [vmem:[%s846_s3 + $0x40] sm:$0xff] }
  0x12   :  { %207 = vmatpush.bf16.msra.mxu0 %v548_v11 }
  0x13   :  { %558 = vmatpush.bf16.msra.mxu2 %v548_v11 }
  0x16   :  { %506 = vmatmul.msk.bf16.gmra.mxu1 %vm178_vm0, %v420_v14  ;;  %208 = vmatpush.bf16.msra.mxu0 %v547_v15 }
  0x17   :  { %559 = vmatpush.bf16.msra.mxu2 %v547_v15  ;;  %511 = vmatmul.msk.bf16.gmra.mxu3 %vm178_vm0, %v460_v19 }
  0x1a   :  { %209 = vmatpush.bf16.msra.mxu0 %v546_v16 }
  0x1b   :  { %560 = vmatpush.bf16.msra.mxu2 %v546_v16 }
  0x1e   :  { %210 = vmatpush.bf16.msra.mxu0 %v545_v20 }
  0x1f   :  { %561 = vmatpush.bf16.msra.mxu2 %v545_v20 }
  0x21   :  { %211 = vmatmul.bf16.vlgmr.msra.gmra.mxu0 %v408_v25 }
  0x22   :  { %231 = vmatmul.bf16.vlgmr.msra.gmra.mxu2 %v440_v26  ;;  %v331_v26 = vld [vmem:[%s846_s3 + $0x50] sm:$0xff] }
  0x26   :  { %507 = vmatmul.msk.bf16.gmra.mxu1 %vm178_vm0, %v428_v29  ;;  %v324_v29 = vld [vmem:[%s846_s3 + $0x18] sm:$0xff] }
  0x27   :  { %512 = vmatmul.msk.bf16.gmra.mxu3 %vm178_vm0, %v468_v32 }
  0x31   :  { %216 = vmatmul.bf16.gmra.mxu0 %v416_v37 }
  0x32   :  { %236 = vmatmul.bf16.gmra.mxu2 %v448_v38 }
  0x36   :  { %508 = vmatmul.msk.bf16.gmra.mxu1 %vm178_vm0, %v436_v41 }
  0x41   :  { %221 = vmatmul.bf16.gmra.mxu0 %v424_v46 }
  0x42   :  { %241 = vmatmul.bf16.gmra.mxu2 %v456_v47 }
  0x46   :  { %509 = vmatmul.msk.bf16.gmra.mxu1 %vm178_vm0, %v444_v50 }
  0x51   :  { %226 = vmatmul.bf16.gmra.mxu0 %v432_v55 }
  0x52   :  { %246 = vmatmul.bf16.gmra.mxu2 %v464_v56  ;;  %v333_v56 = vld [vmem:[%s846_s3 + $0x60] sm:$0xff] }
  0x83   :  { %v261_v57 = vpop.f32.mrf.mxu1 }
  0x8a   :  { %v286_v12 = vpop.f32.mrf.mxu3 }
  0x8b   :  { %v263_v58 = vpop.f32.mrf.mxu1 }
  0x92   :  { %v288_v23 = vpop.f32.mrf.mxu3 }
  0x93   :  { %v266_v59 = vpop.f32.mrf.mxu1 }
  0x9a   :  { %v291_v40 = vpop.f32.mrf.mxu3 }
  0x9b   :  { %v268_v60 = vpop.f32.mrf.mxu1 }
  0x9e   :  { %v212_v62 = vpop.f32.mrf.mxu0 }
  0x9f   :  { %v262_v63 = vadd.f32 %v261_v57, %v212_v62 }
  0xa1   :  { %v305_v1 = vmul.f32 %v723_v61, %v262_v63 }
  0xa2   :  { %v293_v62 = vpop.f32.mrf.mxu3 }
  0xa3   :  { %v337_v2 = vadd.f32 %v321_v0, %v305_v1  ;;  %v271_v3 = vpop.f32.mrf.mxu1 }
  0xa5   :  { %v513_v4 = vclamps-f32 %v337_v2, 1.0  ;;  %v232_v5 = vpop.f32.mrf.mxu2 }
  0xa6   :  { %v214_v6 = vpop.f32.mrf.mxu0 }
  0xa7   :  { %385 = vst [vmem:[%s847_s4] sm:$0xff] %v513_v4  ;;  %v264_v7 = vadd.f32 %v263_v58, %v214_v6 }
  0xa9   :  { %v306_v9 = vmul.f32 %v723_v61, %v264_v7  ;;  %v330_v7 = vld [vmem:[%s846_s3 + $0x48] sm:$0xff] }
  0xab   :  { %v338_v10 = vadd.f32 %v322_v8, %v306_v9  ;;  %v273_v11 = vpop.f32.mrf.mxu1 }
  0xad   :  { %v514_v13 = vclamps-f32 %v338_v10, 1.0  ;;  %v234_v14 = vpop.f32.mrf.mxu2 }
  0xae   :  { %v217_v15 = vpop.f32.mrf.mxu0 }
  0xaf   :  { %386 = vst [vmem:[%s847_s4 + $0x8] sm:$0xff] %v514_v13  ;;  %v267_v16 = vadd.f32 %v266_v59, %v217_v15 }
  0xb1   :  { %v307_v18 = vmul.f32 %v723_v61, %v267_v16  ;;  %v327_v16 = vld [vmem:[%s846_s3 + $0x30] sm:$0xff] }
  0xb3   :  { %v339_v19 = vadd.f32 %v323_v17, %v307_v18  ;;  %v743_v20 = vpop.f32.mrf.mxu1 }
  0xb5   :  { %v515_v21 = vclamps-f32 %v339_v19, 1.0  ;;  %v237_v22 = vpop.f32.mrf.mxu2 }
  0xb6   :  { %v287_v24 = vadd.f32 %v286_v12, %v237_v22  ;;  %v219_v25 = vpop.f32.mrf.mxu0  ;;  %v334_v12 = vld [vmem:[%s846_s3 + $0x68] sm:$0xff] }
  0xb7   :  { %387 = vst [vmem:[%s847_s4 + $0x10] sm:$0xff] %v515_v21  ;;  %v269_v27 = vadd.f32 %v268_v60, %v219_v25  ;;  %v326_v60 = vld [vmem:[%s846_s3 + $0x28] sm:$0xff]  ;;  %v296_v21 = vpop.f32.mrf.mxu3 }
  0xb8   :  { %v315_v28 = vmul.f32 %v723_v61, %v287_v24 }
  0xb9   :  { %v308_v30 = vmul.f32 %v723_v61, %v269_v27  ;;  %v335_v27 = vld [vmem:[%s846_s3 + $0x70] sm:$0xff] }
  0xba   :  { %v347_v31 = vadd.f32 %v331_v26, %v315_v28 }
  0xbb   :  { %v340_v32 = vadd.f32 %v324_v29, %v308_v30  ;;  %v756_v33 = vpop.f32.mrf.mxu1  ;;  %v328_v30 = vld [vmem:[%s846_s3 + $0x38] sm:$0xff] }
  0xbc   :  { %v523_v34 = vclamps-f32 %v347_v31, 1.0 }
  0xbd   :  { %v516_v35 = vclamps-f32 %v340_v32, 1.0  ;;  %v239_v36 = vpop.f32.mrf.mxu2 }
  0xbe   :  { %395 = vst [vmem:[%s847_s4 + $0x50] sm:$0xff] %v523_v34  ;;  %v289_v37 = vadd.f32 %v288_v23, %v239_v36  ;;  %v222_v38 = vpop.f32.mrf.mxu0 }
  0xbf   :  { %388 = vst [vmem:[%s847_s4 + $0x18] sm:$0xff] %v516_v35  ;;  %v272_v41 = vadd.f32 %v271_v3, %v222_v38  ;;  %v298_v36 = vpop.f32.mrf.mxu3 }
  0xc0   :  { %v316_v42 = vmul.f32 %v723_v61, %v289_v37 }
  0xc1   :  { %v309_v44 = vmul.f32 %v723_v61, %v272_v41 }
  0xc2   :  { %v348_v45 = vadd.f32 %v332_v39, %v316_v42 }
  0xc3   :  { %v341_v46 = vadd.f32 %v325_v43, %v309_v44  ;;  %v281_v47 = vpop.f32.mrf.mxu1 }
  0xc4   :  { %v524_v48 = vclamps-f32 %v348_v45, 1.0  ;;  %v282_v49 = vadd.f32 %v281_v47, %v232_v5 }
  0xc5   :  { %v517_v50 = vclamps-f32 %v341_v46, 1.0  ;;  %v242_v52 = vpop.f32.mrf.mxu2 }
  0xc6   :  { %396 = vst [vmem:[%s847_s4 + $0x58] sm:$0xff] %v524_v48  ;;  %v313_v53 = vmul.f32 %v723_v61, %v282_v49  ;;  %v292_v54 = vadd.f32 %v291_v40, %v242_v52  ;;  %v224_v55 = vpop.f32.mrf.mxu0 }
  0xc7   :  { %389 = vst [vmem:[%s847_s4 + $0x20] sm:$0xff] %v517_v50  ;;  %v274_v57 = vadd.f32 %v273_v11, %v224_v55 }
  0xc8   :  { %v345_v58 = vadd.f32 %v329_v51, %v313_v53  ;;  %v317_v59 = vmul.f32 %v723_v61, %v292_v54 }
  0xc9   :  { %v310_v63 = vmul.f32 %v723_v61, %v274_v57 }
  0xca   :  { %v521_v0 = vclamps-f32 %v345_v58, 1.0  ;;  %v349_v1 = vadd.f32 %v333_v56, %v317_v59 }
  0xcb   :  { %v342_v2 = vadd.f32 %v326_v60, %v310_v63  ;;  %v283_v3 = vpop.f32.mrf.mxu1 }
  0xcc   :  { %393 = vst [vmem:[%s847_s4 + $0x40] sm:$0xff] %v521_v0  ;;  %v525_v4 = vclamps-f32 %v349_v1, 1.0  ;;  %v284_v5 = vadd.f32 %v283_v3, %v234_v14 }
  0xcd   :  { %v518_v6 = vclamps-f32 %v342_v2, 1.0  ;;  %v244_v8 = vpop.f32.mrf.mxu2 }
  0xce   :  { %397 = vst [vmem:[%s847_s4 + $0x60] sm:$0xff] %v525_v4  ;;  %v314_v9 = vmul.f32 %v723_v61, %v284_v5  ;;  %v294_v10 = vadd.f32 %v293_v62, %v244_v8  ;;  %v227_v11 = vpop.f32.mrf.mxu0 }
  0xcf   :  { %390 = vst [vmem:[%s847_s4 + $0x28] sm:$0xff] %v518_v6  ;;  %v277_v13 = vadd.f32 %v743_v20, %v227_v11 }
  0xd0   :  { %v346_v14 = vadd.f32 %v330_v7, %v314_v9  ;;  %v318_v15 = vmul.f32 %v723_v61, %v294_v10 }
  0xd1   :  { %v311_v17 = vmul.f32 %v723_v61, %v277_v13 }
  0xd2   :  { %v522_v18 = vclamps-f32 %v346_v14, 1.0  ;;  %v350_v19 = vadd.f32 %v334_v12, %v318_v15 }
  0xd3   :  { %v343_v22 = vadd.f32 %v327_v16, %v311_v17 }
  0xd4   :  { %394 = vst [vmem:[%s847_s4 + $0x48] sm:$0xff] %v522_v18  ;;  %v526_v23 = vclamps-f32 %v350_v19, 1.0 }
  0xd5   :  { %v519_v24 = vclamps-f32 %v343_v22, 1.0  ;;  %v247_v20 = vpop.f32.mrf.mxu2 }
  0xd6   :  { %398 = vst [vmem:[%s847_s4 + $0x68] sm:$0xff] %v526_v23  ;;  %v297_v25 = vadd.f32 %v296_v21, %v247_v20  ;;  %v229_v26 = vpop.f32.mrf.mxu0 }
  0xd7   :  { %391 = vst [vmem:[%s847_s4 + $0x30] sm:$0xff] %v519_v24  ;;  %v279_v28 = vadd.f32 %v756_v33, %v229_v26  ;;  %v336_v33 = vld [vmem:[%s846_s3 + $0x78] sm:$0xff] }
  0xd8   :  { %v319_v29 = vmul.f32 %v723_v61, %v297_v25 }
  0xd9   :  { %v312_v31 = vmul.f32 %v723_v61, %v279_v28 }
  0xda   :  { %v351_v32 = vadd.f32 %v335_v27, %v319_v29 }
  0xdb   :  { %v344_v34 = vadd.f32 %v328_v30, %v312_v31 }
  0xdc   :  { %v527_v35 = vclamps-f32 %v351_v32, 1.0 }
  0xdd   :  { %v520_v37 = vclamps-f32 %v344_v34, 1.0  ;;  %v249_v38 = vpop.f32.mrf.mxu2 }
  0xde   :  { %399 = vst [vmem:[%s847_s4 + $0x70] sm:$0xff] %v527_v35  ;;  %v299_v39 = vadd.f32 %v298_v36, %v249_v38 }
  0xdf   :  { %392 = vst [vmem:[%s847_s4 + $0x38] sm:$0xff] %v520_v37 }
  0xe0   :  { %v320_v40 = vmul.f32 %v723_v61, %v299_v39 }
  0xe2   :  { %v352_v41 = vadd.f32 %v336_v33, %v320_v40 }
  0xe4   :  { %v528_v42 = vclamps-f32 %v352_v41, 1.0 }
  0xe6   :  { %400 = vst [vmem:[%s847_s4 + $0x78] sm:$0xff] %v528_v42 }

// kernel: _lambda_.25
= control target key start
LH: loop header
LB: loop body
LE: loop exit
PB: predicated region body
PF: predicated region fallthrough
CT: control target
= control target key end

     0   :  { %vm175_vm0 = vcmask 130048   ;;  %s701_s1 = inlined_call_operand.vmem [shape: bf16[144,128], index: 1, kind: input, shape index: {}]   ;;  %s702_s0 = inlined_call_operand.vmem [shape: bf16[128,144], index: 0, kind: input, shape index: {}]   ;;  %s703_s2 = inlined_call_operand.vmem [shape: f32[1,128], index: 2, kind: input, shape index: {}]   ;;  %s704_s3 = inlined_call_operand.vmem [shape: f32[128,128], index: 3, kind: output, shape index: {}]  }
   0x1   :  { %v469_v0 = vld [vmem:[%s701_s1 + $0x38] sm:$0xff]  ;;  %v470_v1 = vld [vmem:[%s701_s1 + $0x40] sm:$0xff]  ;;  %v342_v3 = vld [vmem:[%s702_s0 + $0x8] sm:$0xf0] }
   0x2   :  { %v446_v2 = vld [vmem:[%s702_s0 + $0x4] sm:$0xf]  ;;  %200 = vmatpush.bf16.msra.mxu0 %v469_v0  ;;  %471 = vmatpush.bf16.msra.mxu2 %v469_v0  ;;  %v468_v5 = vld [vmem:[%s701_s1 + $0x30] sm:$0xff]  ;;  %v467_v6 = vld [vmem:[%s701_s1 + $0x28] sm:$0xff] }
   0x3   :  { %v345_v4 = vor.u32 %v446_v2, %v342_v3  ;;  %256 = vmatpush.bf16.msra.mxu1 %v470_v1  ;;  %479 = vmatpush.bf16.msra.mxu3 %v470_v1  ;;  %v456_v7 = vld [vmem:[%s702_s0 + $0x54] sm:$0xf]  ;;  %v382_v8 = vld [vmem:[%s702_s0 + $0x58] sm:$0xf0]  ;;  %v466_v10 = vld [vmem:[%s701_s1 + $0x20] sm:$0xff] }
   0x4   :  { %v385_v9 = vor.u32 %v456_v7, %v382_v8  ;;  %v465_v11 = vld [vmem:[%s701_s1 + $0x18] sm:$0xff]  ;;  %v448_v12 = vld [vmem:[%s702_s0 + $0x14] sm:$0xf]  ;;  %v463_v16 = vld [vmem:[%s701_s1 + $0x8] sm:$0xff] }
   0x5   :  { %v350_v13 = vld [vmem:[%s702_s0 + $0x18] sm:$0xf0]  ;;  %v464_v15 = vld [vmem:[%s701_s1 + $0x10] sm:$0xff]  ;;  %v458_v17 = vld [vmem:[%s702_s0 + $0x64] sm:$0xf] }
   0x6   :  { %438 = vmatmul.msk.bf16.vlgmr.msra.gmra.mxu1 %vm175_vm0, %v345_v4  ;;  %201 = vmatpush.bf16.msra.mxu0 %v468_v5  ;;  %v353_v14 = vor.u32 %v448_v12, %v350_v13  ;;  %v390_v18 = vld [vmem:[%s702_s0 + $0x68] sm:$0xf0]  ;;  %v462_v20 = vld [vmem:[%s701_s1] sm:$0xff]  ;;  %v447_v22 = vld [vmem:[%s702_s0 + $0x4] sm:$0xf0] }
   0x7   :  { %472 = vmatpush.bf16.msra.mxu2 %v468_v5  ;;  %443 = vmatmul.msk.bf16.vlgmr.msra.gmra.mxu3 %vm175_vm0, %v385_v9  ;;  %v393_v19 = vor.u32 %v458_v17, %v390_v18  ;;  %v340_v21 = vld [vmem:[%s702_s0] sm:$0xf]  ;;  %v455_v24 = vld [vmem:[%s702_s0 + $0x44] sm:$0xf0]  ;;  %v450_v27 = vld [vmem:[%s702_s0 + $0x24] sm:$0xf] }
   0x8   :  { %v372_v23 = vld [vmem:[%s702_s0 + $0x40] sm:$0xf]  ;;  %v341_v25 = vor.u32 %v447_v22, %v340_v21  ;;  %v358_v28 = vld [vmem:[%s702_s0 + $0x28] sm:$0xf0]  ;;  %v460_v30 = vld [vmem:[%s702_s0 + $0x74] sm:$0xf] }
   0x9   :  { %v373_v26 = vor.u32 %v455_v24, %v372_v23  ;;  %v361_v29 = vor.u32 %v450_v27, %v358_v28  ;;  %v398_v31 = vld [vmem:[%s702_s0 + $0x78] sm:$0xf0]  ;;  %v348_v33 = vld [vmem:[%s702_s0 + $0x10] sm:$0xf]  ;;  %v449_v34 = vld [vmem:[%s702_s0 + $0x14] sm:$0xf0] }
   0xa   :  { %202 = vmatpush.bf16.msra.mxu0 %v467_v6  ;;  %v401_v32 = vor.u32 %v460_v30, %v398_v31  ;;  %v380_v35 = vld [vmem:[%s702_s0 + $0x50] sm:$0xf]  ;;  %v457_v36 = vld [vmem:[%s702_s0 + $0x54] sm:$0xf0]  ;;  %v349_v37 = vor.u32 %v449_v34, %v348_v33  ;;  %v452_v39 = vld [vmem:[%s702_s0 + $0x34] sm:$0xf] }
   0xb   :  { %473 = vmatpush.bf16.msra.mxu2 %v467_v6  ;;  %v381_v38 = vor.u32 %v457_v36, %v380_v35  ;;  %v366_v40 = vld [vmem:[%s702_s0 + $0x38] sm:$0xf0]  ;;  %v356_v42 = vld [vmem:[%s702_s0 + $0x20] sm:$0xf]  ;;  %v451_v43 = vld [vmem:[%s702_s0 + $0x24] sm:$0xf0] }
   0xc   :  { %v369_v41 = vor.u32 %v452_v39, %v366_v40  ;;  %v388_v44 = vld [vmem:[%s702_s0 + $0x60] sm:$0xf]  ;;  %v459_v45 = vld [vmem:[%s702_s0 + $0x64] sm:$0xf0]  ;;  %v357_v46 = vor.u32 %v451_v43, %v356_v42  ;;  %v454_v48 = vld [vmem:[%s702_s0 + $0x44] sm:$0xf] }
   0xd   :  { %v389_v47 = vor.u32 %v459_v45, %v388_v44  ;;  %v374_v49 = vld [vmem:[%s702_s0 + $0x48] sm:$0xf0]  ;;  %v364_v51 = vld [vmem:[%s702_s0 + $0x30] sm:$0xf]  ;;  %v453_v52 = vld [vmem:[%s702_s0 + $0x34] sm:$0xf0] }
   0xe   :  { %203 = vmatpush.bf16.msra.mxu0 %v466_v10  ;;  %v377_v50 = vor.u32 %v454_v48, %v374_v49  ;;  %v396_v53 = vld [vmem:[%s702_s0 + $0x70] sm:$0xf]  ;;  %v461_v54 = vld [vmem:[%s702_s0 + $0x74] sm:$0xf0]  ;;  %v365_v55 = vor.u32 %v453_v52, %v364_v51  ;;  %v635_v61 = vld [vmem:[%s703_s2] ss:$0 sm:$0xff] }
   0xf   :  { %474 = vmatpush.bf16.msra.mxu2 %v466_v10  ;;  %v397_v56 = vor.u32 %v461_v54, %v396_v53 }
  0x12   :  { %204 = vmatpush.bf16.msra.mxu0 %v465_v11 }
  0x13   :  { %475 = vmatpush.bf16.msra.mxu2 %v465_v11 }
  0x16   :  { %439 = vmatmul.msk.bf16.gmra.mxu1 %vm175_vm0, %v353_v14  ;;  %205 = vmatpush.bf16.msra.mxu0 %v464_v15 }
  0x17   :  { %476 = vmatpush.bf16.msra.mxu2 %v464_v15  ;;  %444 = vmatmul.msk.bf16.gmra.mxu3 %vm175_vm0, %v393_v19 }
  0x1a   :  { %206 = vmatpush.bf16.msra.mxu0 %v463_v16 }
  0x1b   :  { %477 = vmatpush.bf16.msra.mxu2 %v463_v16 }
  0x1e   :  { %207 = vmatpush.bf16.msra.mxu0 %v462_v20 }
  0x1f   :  { %478 = vmatpush.bf16.msra.mxu2 %v462_v20 }
  0x21   :  { %208 = vmatmul.bf16.vlgmr.msra.gmra.mxu0 %v341_v25 }
  0x22   :  { %228 = vmatmul.bf16.vlgmr.msra.gmra.mxu2 %v373_v26 }
  0x26   :  { %440 = vmatmul.msk.bf16.gmra.mxu1 %vm175_vm0, %v361_v29 }
  0x27   :  { %445 = vmatmul.msk.bf16.gmra.mxu3 %vm175_vm0, %v401_v32 }
  0x31   :  { %213 = vmatmul.bf16.gmra.mxu0 %v349_v37 }
  0x32   :  { %233 = vmatmul.bf16.gmra.mxu2 %v381_v38 }
  0x36   :  { %441 = vmatmul.msk.bf16.gmra.mxu1 %vm175_vm0, %v369_v41 }
  0x41   :  { %218 = vmatmul.bf16.gmra.mxu0 %v357_v46 }
  0x42   :  { %238 = vmatmul.bf16.gmra.mxu2 %v389_v47 }
  0x46   :  { %442 = vmatmul.msk.bf16.gmra.mxu1 %vm175_vm0, %v377_v50 }
  0x51   :  { %223 = vmatmul.bf16.gmra.mxu0 %v365_v55 }
  0x52   :  { %243 = vmatmul.bf16.gmra.mxu2 %v397_v56 }
  0x83   :  { %v258_v57 = vpop.f32.mrf.mxu1 }
  0x8a   :  { %v283_v7 = vpop.f32.mrf.mxu3 }
  0x8b   :  { %v260_v58 = vpop.f32.mrf.mxu1 }
  0x92   :  { %v285_v14 = vpop.f32.mrf.mxu3 }
  0x93   :  { %v263_v59 = vpop.f32.mrf.mxu1 }
  0x9a   :  { %v288_v24 = vpop.f32.mrf.mxu3 }
  0x9b   :  { %v265_v60 = vpop.f32.mrf.mxu1 }
  0x9e   :  { %v209_v62 = vpop.f32.mrf.mxu0 }
  0x9f   :  { %v259_v63 = vadd.f32 %v258_v57, %v209_v62 }
  0xa1   :  { %v302_v0 = vmul.f32 %v635_v61, %v259_v63 }
  0xa2   :  { %v290_v36 = vpop.f32.mrf.mxu3 }
  0xa3   :  { %318 = vst [vmem:[%s704_s3] sm:$0xff] %v302_v0  ;;  %v268_v1 = vpop.f32.mrf.mxu1 }
  0xa5   :  { %v229_v2 = vpop.f32.mrf.mxu2 }
  0xa6   :  { %v211_v3 = vpop.f32.mrf.mxu0 }
  0xa7   :  { %v261_v4 = vadd.f32 %v260_v58, %v211_v3 }
  0xa9   :  { %v303_v5 = vmul.f32 %v635_v61, %v261_v4 }
  0xaa   :  { %v293_v47 = vpop.f32.mrf.mxu3 }
  0xab   :  { %319 = vst [vmem:[%s704_s3 + $0x8] sm:$0xff] %v303_v5  ;;  %v270_v6 = vpop.f32.mrf.mxu1 }
  0xad   :  { %v231_v8 = vpop.f32.mrf.mxu2 }
  0xae   :  { %v214_v9 = vpop.f32.mrf.mxu0 }
  0xaf   :  { %v264_v10 = vadd.f32 %v263_v59, %v214_v9 }
  0xb1   :  { %v304_v11 = vmul.f32 %v635_v61, %v264_v10 }
  0xb2   :  { %v295_v54 = vpop.f32.mrf.mxu3 }
  0xb3   :  { %320 = vst [vmem:[%s704_s3 + $0x10] sm:$0xff] %v304_v11  ;;  %v273_v12 = vpop.f32.mrf.mxu1 }
  0xb5   :  { %v234_v13 = vpop.f32.mrf.mxu2 }
  0xb6   :  { %v284_v15 = vadd.f32 %v283_v7, %v234_v13  ;;  %v216_v16 = vpop.f32.mrf.mxu0 }
  0xb7   :  { %v266_v17 = vadd.f32 %v265_v60, %v216_v16 }
  0xb8   :  { %v312_v18 = vmul.f32 %v635_v61, %v284_v15 }
  0xb9   :  { %v305_v19 = vmul.f32 %v635_v61, %v266_v17 }
  0xba   :  { %328 = vst [vmem:[%s704_s3 + $0x50] sm:$0xff] %v312_v18 }
  0xbb   :  { %321 = vst [vmem:[%s704_s3 + $0x18] sm:$0xff] %v305_v19  ;;  %v275_v20 = vpop.f32.mrf.mxu1 }
  0xbd   :  { %v236_v21 = vpop.f32.mrf.mxu2 }
  0xbe   :  { %v286_v22 = vadd.f32 %v285_v14, %v236_v21  ;;  %v219_v23 = vpop.f32.mrf.mxu0 }
  0xbf   :  { %v269_v25 = vadd.f32 %v268_v1, %v219_v23 }
  0xc0   :  { %v313_v26 = vmul.f32 %v635_v61, %v286_v22 }
  0xc1   :  { %v306_v27 = vmul.f32 %v635_v61, %v269_v25 }
  0xc2   :  { %329 = vst [vmem:[%s704_s3 + $0x58] sm:$0xff] %v313_v26 }
  0xc3   :  { %322 = vst [vmem:[%s704_s3 + $0x20] sm:$0xff] %v306_v27  ;;  %v278_v28 = vpop.f32.mrf.mxu1 }
  0xc4   :  { %v279_v29 = vadd.f32 %v278_v28, %v229_v2 }
  0xc5   :  { %v239_v30 = vpop.f32.mrf.mxu2 }
  0xc6   :  { %v310_v31 = vmul.f32 %v635_v61, %v279_v29  ;;  %v289_v32 = vadd.f32 %v288_v24, %v239_v30  ;;  %v221_v33 = vpop.f32.mrf.mxu0 }
  0xc7   :  { %v271_v34 = vadd.f32 %v270_v6, %v221_v33 }
  0xc8   :  { %326 = vst [vmem:[%s704_s3 + $0x40] sm:$0xff] %v310_v31  ;;  %v314_v35 = vmul.f32 %v635_v61, %v289_v32 }
  0xc9   :  { %v307_v37 = vmul.f32 %v635_v61, %v271_v34 }
  0xca   :  { %330 = vst [vmem:[%s704_s3 + $0x60] sm:$0xff] %v314_v35 }
  0xcb   :  { %323 = vst [vmem:[%s704_s3 + $0x28] sm:$0xff] %v307_v37  ;;  %v280_v38 = vpop.f32.mrf.mxu1 }
  0xcc   :  { %v281_v39 = vadd.f32 %v280_v38, %v231_v8 }
  0xcd   :  { %v241_v40 = vpop.f32.mrf.mxu2 }
  0xce   :  { %v311_v41 = vmul.f32 %v635_v61, %v281_v39  ;;  %v291_v42 = vadd.f32 %v290_v36, %v241_v40  ;;  %v224_v43 = vpop.f32.mrf.mxu0 }
  0xcf   :  { %v274_v44 = vadd.f32 %v273_v12, %v224_v43 }
  0xd0   :  { %327 = vst [vmem:[%s704_s3 + $0x48] sm:$0xff] %v311_v41  ;;  %v315_v45 = vmul.f32 %v635_v61, %v291_v42 }
  0xd1   :  { %v308_v46 = vmul.f32 %v635_v61, %v274_v44 }
  0xd2   :  { %331 = vst [vmem:[%s704_s3 + $0x68] sm:$0xff] %v315_v45 }
  0xd3   :  { %324 = vst [vmem:[%s704_s3 + $0x30] sm:$0xff] %v308_v46 }
  0xd5   :  { %v244_v48 = vpop.f32.mrf.mxu2 }
  0xd6   :  { %v294_v49 = vadd.f32 %v293_v47, %v244_v48  ;;  %v226_v50 = vpop.f32.mrf.mxu0 }
  0xd7   :  { %v276_v51 = vadd.f32 %v275_v20, %v226_v50 }
  0xd8   :  { %v316_v52 = vmul.f32 %v635_v61, %v294_v49 }
  0xd9   :  { %v309_v53 = vmul.f32 %v635_v61, %v276_v51 }
  0xda   :  { %332 = vst [vmem:[%s704_s3 + $0x70] sm:$0xff] %v316_v52 }
  0xdb   :  { %325 = vst [vmem:[%s704_s3 + $0x38] sm:$0xff] %v309_v53 }
  0xdd   :  { %v246_v55 = vpop.f32.mrf.mxu2 }
  0xde   :  { %v296_v56 = vadd.f32 %v295_v54, %v246_v55 }
  0xe0   :  { %v317_v57 = vmul.f32 %v635_v61, %v296_v56 }
  0xe2   :  { %333 = vst [vmem:[%s704_s3 + $0x78] sm:$0xff] %v317_v57 }

// kernel: _lambda_.27
= control target key start
LH: loop header
LB: loop body
LE: loop exit
PB: predicated region body
PF: predicated region fallthrough
CT: control target
= control target key end

     0   :  { %vm314_vm0 = vcmask 261120   ;;  %s1201_s1 = inlined_call_operand.vmem [shape: bf16[288,128], index: 1, kind: input, shape index: {}]   ;;  %s1202_s0 = inlined_call_operand.vmem [shape: bf16[128,288], index: 0, kind: input, shape index: {}]   ;;  %s1203_s2 = inlined_call_operand.vmem [shape: f32[1,128], index: 2, kind: input, shape index: {}]   ;;  %s1204_s3 = inlined_call_operand.vmem [shape: f32[128,128], index: 3, kind: input, shape index: {}]   ;;  %s1205_s4 = inlined_call_operand.vmem [shape: f32[128,128], index: 4, kind: output, shape index: {}]  }
   0x1   :  { %v813_v0 = vld [vmem:[%s1201_s1 + $0x38] sm:$0xff]  ;;  %v823_v2 = vld [vmem:[%s1201_s1 + $0x88] sm:$0xff]  ;;  %v812_v3 = vld [vmem:[%s1201_s1 + $0x30] sm:$0xff] }
   0x2   :  { %v821_v1 = vld [vmem:[%s1201_s1 + $0x78] sm:$0xff]  ;;  %339 = vmatpush.bf16.msra.mxu0 %v813_v0  ;;  %824 = vmatpush.bf16.msra.mxu3 %v813_v0  ;;  %v820_v4 = vld [vmem:[%s1201_s1 + $0x70] sm:$0xff]  ;;  %v822_v5 = vld [vmem:[%s1201_s1 + $0x80] sm:$0xff] }
   0x3   :  { %388 = vmatpush.bf16.msra.mxu1 %v821_v1  ;;  %443 = vmatpush.bf16.msra.mxu2 %v823_v2  ;;  %v600_v6 = vld [vmem:[%s1202_s0 + $0x8] sm:$0xf]  ;;  %v784_v7 = vld [vmem:[%s1202_s0 + $0x10] sm:$0xf0]  ;;  %v810_v11 = vld [vmem:[%s1201_s1 + $0x20] sm:$0xff] }
   0x4   :  { %v601_v8 = vor.u32 %v784_v7, %v600_v6  ;;  %v811_v9 = vld [vmem:[%s1201_s1 + $0x28] sm:$0xff]  ;;  %v818_v12 = vld [vmem:[%s1201_s1 + $0x60] sm:$0xff]  ;;  %v809_v13 = vld [vmem:[%s1201_s1 + $0x18] sm:$0xff] }
   0x5   :  { %v819_v10 = vld [vmem:[%s1201_s1 + $0x68] sm:$0xff]  ;;  %v817_v14 = vld [vmem:[%s1201_s1 + $0x58] sm:$0xff]  ;;  %v808_v15 = vld [vmem:[%s1201_s1 + $0x10] sm:$0xff] }
   0x6   :  { %340 = vmatpush.bf16.msra.mxu0 %v812_v3  ;;  %825 = vmatpush.bf16.msra.mxu3 %v812_v3  ;;  %v816_v16 = vld [vmem:[%s1201_s1 + $0x50] sm:$0xff]  ;;  %v612_v17 = vld [vmem:[%s1202_s0 + $0x20] sm:$0xf]  ;;  %v787_v18 = vld [vmem:[%s1202_s0 + $0x28] sm:$0xf0] }
   0x7   :  { %389 = vmatpush.bf16.msra.mxu1 %v820_v4  ;;  %444 = vmatpush.bf16.msra.mxu2 %v822_v5  ;;  %v613_v19 = vor.u32 %v787_v18, %v612_v17  ;;  %v807_v20 = vld [vmem:[%s1201_s1 + $0x8] sm:$0xff]  ;;  %v806_v22 = vld [vmem:[%s1201_s1] sm:$0xff]  ;;  %v664_v26 = vld [vmem:[%s1202_s0 + $0x90] sm:$0xf] }
   0x8   :  { %v815_v21 = vld [vmem:[%s1201_s1 + $0x48] sm:$0xff]  ;;  %v814_v23 = vld [vmem:[%s1201_s1 + $0x40] sm:$0xff]  ;;  %v801_v27 = vld [vmem:[%s1202_s0 + $0x98] sm:$0xf0] }
   0x9   :  { %v592_v24 = vld [vmem:[%s1202_s0] sm:$0xf]  ;;  %v783_v25 = vld [vmem:[%s1202_s0 + $0x8] sm:$0xf0]  ;;  %v782_v28 = vld [vmem:[%s1202_s0 + $0x4] sm:$0xf]  ;;  %v665_v31 = vor.u32 %v801_v27, %v664_v26 }
   0xa   :  { %758 = vmatmul.msk.bf16.vlgmr.msra.gmra.mxu2 %vm314_vm0, %v601_v8  ;;  %341 = vmatpush.bf16.msra.mxu0 %v811_v9  ;;  %v594_v29 = vld [vmem:[%s1202_s0 + $0xc] sm:$0xf0]  ;;  %v593_v30 = vor.u32 %v783_v25, %v592_v24  ;;  %v624_v33 = vld [vmem:[%s1202_s0 + $0x38] sm:$0xf]  ;;  %v790_v34 = vld [vmem:[%s1202_s0 + $0x40] sm:$0xf0] }
   0xb   :  { %826 = vmatpush.bf16.msra.mxu3 %v811_v9  ;;  %390 = vmatpush.bf16.msra.mxu1 %v819_v10  ;;  %v597_v32 = vor.u32 %v782_v28, %v594_v29  ;;  %v625_v35 = vor.u32 %v790_v34, %v624_v33  ;;  %v604_v36 = vld [vmem:[%s1202_s0 + $0x18] sm:$0xf]  ;;  %v786_v37 = vld [vmem:[%s1202_s0 + $0x20] sm:$0xf0]  ;;  %v676_v38 = vld [vmem:[%s1202_s0 + $0xa8] sm:$0xf] }
   0xc   :  { %v804_v39 = vld [vmem:[%s1202_s0 + $0xb0] sm:$0xf0]  ;;  %v785_v40 = vld [vmem:[%s1202_s0 + $0x1c] sm:$0xf]  ;;  %v606_v41 = vld [vmem:[%s1202_s0 + $0x24] sm:$0xf0]  ;;  %v605_v42 = vor.u32 %v786_v37, %v604_v36 }
   0xd   :  { %v677_v43 = vor.u32 %v804_v39, %v676_v38  ;;  %v609_v44 = vor.u32 %v785_v40, %v606_v41  ;;  %v636_v45 = vld [vmem:[%s1202_s0 + $0x50] sm:$0xf]  ;;  %v793_v46 = vld [vmem:[%s1202_s0 + $0x58] sm:$0xf0]  ;;  %v788_v50 = vld [vmem:[%s1202_s0 + $0x34] sm:$0xf] }
   0xe   :  { %342 = vmatpush.bf16.msra.mxu0 %v810_v11  ;;  %v637_v47 = vor.u32 %v793_v46, %v636_v45  ;;  %v616_v48 = vld [vmem:[%s1202_s0 + $0x30] sm:$0xf]  ;;  %v789_v49 = vld [vmem:[%s1202_s0 + $0x38] sm:$0xf0]  ;;  %v618_v51 = vld [vmem:[%s1202_s0 + $0x3c] sm:$0xf0] }
   0xf   :  { %827 = vmatpush.bf16.msra.mxu3 %v810_v11  ;;  %391 = vmatpush.bf16.msra.mxu1 %v818_v12  ;;  %v800_v52 = vld [vmem:[%s1202_s0 + $0x94] sm:$0xf]  ;;  %v666_v53 = vld [vmem:[%s1202_s0 + $0x9c] sm:$0xf0]  ;;  %v617_v54 = vor.u32 %v789_v49, %v616_v48  ;;  %v621_v55 = vor.u32 %v788_v50, %v618_v51  ;;  %v648_v57 = vld [vmem:[%s1202_s0 + $0x68] sm:$0xf] }
  0x10   :  { %v669_v56 = vor.u32 %v800_v52, %v666_v53  ;;  %v796_v58 = vld [vmem:[%s1202_s0 + $0x70] sm:$0xf0]  ;;  %v628_v60 = vld [vmem:[%s1202_s0 + $0x48] sm:$0xf]  ;;  %v791_v62 = vld [vmem:[%s1202_s0 + $0x4c] sm:$0xf] }
  0x11   :  { %v649_v59 = vor.u32 %v796_v58, %v648_v57  ;;  %v792_v61 = vld [vmem:[%s1202_s0 + $0x50] sm:$0xf0]  ;;  %v630_v63 = vld [vmem:[%s1202_s0 + $0x54] sm:$0xf0]  ;;  %v803_v0 = vld [vmem:[%s1202_s0 + $0xac] sm:$0xf] }
  0x12   :  { %343 = vmatpush.bf16.msra.mxu0 %v809_v13  ;;  %v629_v2 = vor.u32 %v792_v61, %v628_v60  ;;  %v633_v3 = vor.u32 %v791_v62, %v630_v63  ;;  %v660_v5 = vld [vmem:[%s1202_s0 + $0x80] sm:$0xf]  ;;  %v799_v6 = vld [vmem:[%s1202_s0 + $0x88] sm:$0xf0]  ;;  %v642_v11 = vld [vmem:[%s1202_s0 + $0x6c] sm:$0xf0] }
  0x13   :  { %828 = vmatpush.bf16.msra.mxu3 %v809_v13  ;;  %392 = vmatpush.bf16.msra.mxu1 %v817_v14  ;;  %v661_v7 = vor.u32 %v799_v6, %v660_v5  ;;  %v640_v8 = vld [vmem:[%s1202_s0 + $0x60] sm:$0xf]  ;;  %v795_v9 = vld [vmem:[%s1202_s0 + $0x68] sm:$0xf0]  ;;  %v652_v17 = vld [vmem:[%s1202_s0 + $0x78] sm:$0xf] }
  0x14   :  { %v798_v18 = vld [vmem:[%s1202_s0 + $0x80] sm:$0xf0]  ;;  %v805_v24 = vld [vmem:[%s1202_s0 + $0xb8] sm:$0xf0]  ;;  %v508_v52 = vld [vmem:[%s1204_s3 + $0x10] sm:$0xff] }
  0x15   :  { %v506_v34 = vld [vmem:[%s1204_s3] sm:$0xff]  ;;  %v509_v62 = vld [vmem:[%s1204_s3 + $0x18] sm:$0xff] }
  0x16   :  { %344 = vmatpush.bf16.msra.mxu0 %v808_v15 }
  0x17   :  { %829 = vmatpush.bf16.msra.mxu3 %v808_v15  ;;  %393 = vmatpush.bf16.msra.mxu1 %v816_v16  ;;  %v802_v15 = vld [vmem:[%s1202_s0 + $0xa0] sm:$0xf0] }
  0x1a   :  { %759 = vmatmul.msk.bf16.gmra.mxu2 %vm314_vm0, %v613_v19  ;;  %345 = vmatpush.bf16.msra.mxu0 %v807_v20  ;;  %v797_v19 = vld [vmem:[%s1202_s0 + $0x7c] sm:$0xf] }
  0x1b   :  { %830 = vmatpush.bf16.msra.mxu3 %v807_v20  ;;  %394 = vmatpush.bf16.msra.mxu1 %v815_v21  ;;  %v654_v20 = vld [vmem:[%s1202_s0 + $0x84] sm:$0xf0] }
  0x1e   :  { %346 = vmatpush.bf16.msra.mxu0 %v806_v22 }
  0x1f   :  { %831 = vmatpush.bf16.msra.mxu3 %v806_v22  ;;  %395 = vmatpush.bf16.msra.mxu1 %v814_v23  ;;  %v657_v22 = vor.u32 %v797_v19, %v654_v20 }
  0x21   :  { %347 = vmatmul.bf16.vlgmr.msra.gmra.mxu0 %v593_v30 }
  0x22   :  { %377 = vmatmul.bf16.vlgmr.msra.gmra.mxu3 %v665_v31  ;;  %396 = vmatmul.bf16.vlgmr.msra.gmra.mxu1 %v597_v32  ;;  %v1075_v32 = vld [vmem:[%s1203_s2] ss:$0 sm:$0xff] }
  0x23   :  { %832 = vmatpush.bf16.msrb.mxu3 %v821_v1  ;;  %v678_v1 = vld [vmem:[%s1202_s0 + $0xb4] sm:$0xf0] }
  0x27   :  { %833 = vmatpush.bf16.msrb.mxu3 %v820_v4  ;;  %v681_v4 = vor.u32 %v803_v0, %v678_v1 }
  0x2a   :  { %760 = vmatmul.msk.bf16.gmra.mxu2 %vm314_vm0, %v625_v35 }
  0x2b   :  { %834 = vmatpush.bf16.msrb.mxu3 %v819_v10  ;;  %v794_v10 = vld [vmem:[%s1202_s0 + $0x64] sm:$0xf] }
  0x2c   :  { %v645_v13 = vor.u32 %v794_v10, %v642_v11 }
  0x2f   :  { %835 = vmatpush.bf16.msrb.mxu3 %v818_v12  ;;  %v641_v12 = vor.u32 %v795_v9, %v640_v8 }
  0x31   :  { %352 = vmatmul.bf16.gmra.mxu0 %v605_v42 }
  0x32   :  { %382 = vmatmul.bf16.gmra.mxu3 %v677_v43  ;;  %401 = vmatmul.bf16.gmra.mxu1 %v609_v44  ;;  %v507_v43 = vld [vmem:[%s1204_s3 + $0x8] sm:$0xff] }
  0x33   :  { %836 = vmatpush.bf16.msrb.mxu3 %v817_v14  ;;  %v672_v14 = vld [vmem:[%s1202_s0 + $0x98] sm:$0xf] }
  0x37   :  { %837 = vmatpush.bf16.msrb.mxu3 %v816_v16  ;;  %v673_v16 = vor.u32 %v802_v15, %v672_v14 }
  0x3a   :  { %761 = vmatmul.msk.bf16.gmra.mxu2 %vm314_vm0, %v637_v47 }
  0x3b   :  { %838 = vmatpush.bf16.msrb.mxu3 %v815_v21  ;;  %v653_v21 = vor.u32 %v798_v18, %v652_v17  ;;  %v511_v17 = vld [vmem:[%s1204_s3 + $0x28] sm:$0xff] }
  0x3f   :  { %839 = vmatpush.bf16.msrb.mxu3 %v814_v23  ;;  %v684_v23 = vld [vmem:[%s1202_s0 + $0xb0] sm:$0xf] }
  0x40   :  { %v685_v25 = vor.u32 %v805_v24, %v684_v23 }
  0x41   :  { %357 = vmatmul.bf16.gmra.mxu0 %v617_v54 }
  0x42   :  { %406 = vmatmul.bf16.gmra.mxu1 %v621_v55  ;;  %426 = vmatmul.bf16.vlgmr.msrb.gmra.mxu3 %v669_v56 }
  0x4a   :  { %762 = vmatmul.msk.bf16.gmra.mxu2 %vm314_vm0, %v649_v59 }
  0x51   :  { %362 = vmatmul.bf16.gmra.mxu0 %v629_v2 }
  0x52   :  { %411 = vmatmul.bf16.gmra.mxu1 %v633_v3  ;;  %431 = vmatmul.bf16.gmra.mxu3 %v681_v4 }
  0x5a   :  { %763 = vmatmul.msk.bf16.gmra.mxu2 %vm314_vm0, %v661_v7  ;;  %v510_v7 = vld [vmem:[%s1204_s3 + $0x20] sm:$0xff] }
  0x61   :  { %367 = vmatmul.bf16.gmra.mxu0 %v641_v12 }
  0x62   :  { %416 = vmatmul.bf16.gmra.mxu1 %v645_v13 }
  0x6a   :  { %764 = vmatmul.msk.bf16.gmra.mxu2 %vm314_vm0, %v673_v16 }
  0x71   :  { %372 = vmatmul.bf16.gmra.mxu0 %v653_v21 }
  0x72   :  { %421 = vmatmul.bf16.gmra.mxu1 %v657_v22 }
  0x7a   :  { %765 = vmatmul.msk.bf16.gmra.mxu2 %vm314_vm0, %v685_v25 }
  0x8d   :  { %v446_v26 = vpop.f32.mrf.mxu2 }
  0x95   :  { %v448_v27 = vpop.f32.mrf.mxu2 }
  0x9d   :  { %v451_v28 = vpop.f32.mrf.mxu2 }
  0x9e   :  { %v348_v29 = vpop.f32.mrf.mxu0 }
  0x9f   :  { %v397_v30 = vpop.f32.mrf.mxu1 }
  0xa0   :  { %v398_v31 = vadd.f32 %v397_v30, %v348_v29 }
  0xa2   :  { %v447_v33 = vadd.f32 %v446_v26, %v398_v31 }
  0xa4   :  { %v490_v35 = vmul.f32 %v1075_v32, %v447_v33 }
  0xa5   :  { %v453_v36 = vpop.f32.mrf.mxu2  ;;  %v1098_v61 = vpop.f32.mrf.mxu3 }
  0xa6   :  { %v522_v37 = vadd.f32 %v506_v34, %v490_v35  ;;  %v350_v38 = vpop.f32.mrf.mxu0 }
  0xa7   :  { %v399_v39 = vpop.f32.mrf.mxu1 }
  0xa8   :  { %v766_v40 = vclamps-f32 %v522_v37, 1.0  ;;  %v400_v41 = vadd.f32 %v399_v39, %v350_v38  ;;  %v513_v38 = vld [vmem:[%s1204_s3 + $0x38] sm:$0xff] }
  0xaa   :  { %570 = vst [vmem:[%s1205_s4] sm:$0xff] %v766_v40  ;;  %v449_v42 = vadd.f32 %v448_v27, %v400_v41  ;;  %v512_v27 = vld [vmem:[%s1204_s3 + $0x30] sm:$0xff] }
  0xac   :  { %v491_v44 = vmul.f32 %v1075_v32, %v449_v42 }
  0xad   :  { %v456_v45 = vpop.f32.mrf.mxu2  ;;  %v1111_v9 = vpop.f32.mrf.mxu3 }
  0xae   :  { %v523_v46 = vadd.f32 %v507_v43, %v491_v44  ;;  %v353_v47 = vpop.f32.mrf.mxu0 }
  0xaf   :  { %v402_v48 = vpop.f32.mrf.mxu1 }
  0xb0   :  { %v767_v49 = vclamps-f32 %v523_v46, 1.0  ;;  %v403_v50 = vadd.f32 %v402_v48, %v353_v47  ;;  %v514_v48 = vld [vmem:[%s1204_s3 + $0x40] sm:$0xff] }
  0xb2   :  { %571 = vst [vmem:[%s1205_s4 + $0x8] sm:$0xff] %v767_v49  ;;  %v452_v51 = vadd.f32 %v451_v28, %v403_v50 }
  0xb4   :  { %v492_v53 = vmul.f32 %v1075_v32, %v452_v51 }
  0xb5   :  { %v458_v54 = vpop.f32.mrf.mxu2  ;;  %v1120_v22 = vpop.f32.mrf.mxu3 }
  0xb6   :  { %v524_v55 = vadd.f32 %v508_v52, %v492_v53  ;;  %v355_v56 = vpop.f32.mrf.mxu0 }
  0xb7   :  { %v404_v57 = vpop.f32.mrf.mxu1 }
  0xb8   :  { %v768_v58 = vclamps-f32 %v524_v55, 1.0  ;;  %v405_v59 = vadd.f32 %v404_v57, %v355_v56  ;;  %v515_v57 = vld [vmem:[%s1204_s3 + $0x48] sm:$0xff] }
  0xba   :  { %572 = vst [vmem:[%s1205_s4 + $0x10] sm:$0xff] %v768_v58  ;;  %v454_v60 = vadd.f32 %v453_v36, %v405_v59 }
  0xbc   :  { %v493_v63 = vmul.f32 %v1075_v32, %v454_v60 }
  0xbd   :  { %v461_v0 = vpop.f32.mrf.mxu2  ;;  %v1129_v36 = vpop.f32.mrf.mxu3 }
  0xbe   :  { %v525_v1 = vadd.f32 %v509_v62, %v493_v63  ;;  %v358_v2 = vpop.f32.mrf.mxu0 }
  0xbf   :  { %v407_v3 = vpop.f32.mrf.mxu1 }
  0xc0   :  { %v769_v4 = vclamps-f32 %v525_v1, 1.0  ;;  %v408_v5 = vadd.f32 %v407_v3, %v358_v2  ;;  %v518_v2 = vld [vmem:[%s1204_s3 + $0x60] sm:$0xff] }
  0xc2   :  { %573 = vst [vmem:[%s1205_s4 + $0x18] sm:$0xff] %v769_v4  ;;  %v457_v6 = vadd.f32 %v456_v45, %v408_v5 }
  0xc4   :  { %v494_v8 = vmul.f32 %v1075_v32, %v457_v6 }
  0xc5   :  { %v463_v10 = vpop.f32.mrf.mxu2  ;;  %v427_v47 = vpop.f32.mrf.mxu3 }
  0xc6   :  { %v526_v11 = vadd.f32 %v510_v7, %v494_v8  ;;  %v360_v12 = vpop.f32.mrf.mxu0  ;;  %v428_v58 = vadd.f32 %v427_v47, %v1098_v61  ;;  %v516_v8 = vld [vmem:[%s1204_s3 + $0x50] sm:$0xff] }
  0xc7   :  { %v409_v13 = vpop.f32.mrf.mxu1 }
  0xc8   :  { %v770_v14 = vclamps-f32 %v526_v11, 1.0  ;;  %v410_v15 = vadd.f32 %v409_v13, %v360_v12 }
  0xca   :  { %574 = vst [vmem:[%s1205_s4 + $0x20] sm:$0xff] %v770_v14  ;;  %v459_v16 = vadd.f32 %v458_v54, %v410_v15 }
  0xcc   :  { %v495_v18 = vmul.f32 %v1075_v32, %v459_v16 }
  0xcd   :  { %v466_v19 = vpop.f32.mrf.mxu2  ;;  %v429_v60 = vpop.f32.mrf.mxu3 }
  0xce   :  { %v527_v20 = vadd.f32 %v511_v17, %v495_v18  ;;  %v363_v21 = vpop.f32.mrf.mxu0  ;;  %v519_v18 = vld [vmem:[%s1204_s3 + $0x68] sm:$0xff] }
  0xcf   :  { %v412_v23 = vpop.f32.mrf.mxu1 }
  0xd0   :  { %v771_v24 = vclamps-f32 %v527_v20, 1.0  ;;  %v413_v25 = vadd.f32 %v412_v23, %v363_v21 }
  0xd2   :  { %575 = vst [vmem:[%s1205_s4 + $0x28] sm:$0xff] %v771_v24  ;;  %v462_v26 = vadd.f32 %v461_v0, %v413_v25  ;;  %v517_v25 = vld [vmem:[%s1204_s3 + $0x58] sm:$0xff] }
  0xd4   :  { %v496_v28 = vmul.f32 %v1075_v32, %v462_v26 }
  0xd5   :  { %v468_v29 = vpop.f32.mrf.mxu2  ;;  %v432_v17 = vpop.f32.mrf.mxu3 }
  0xd6   :  { %v528_v30 = vadd.f32 %v512_v27, %v496_v28  ;;  %v365_v31 = vpop.f32.mrf.mxu0  ;;  %v433_v26 = vadd.f32 %v432_v17, %v1120_v22 }
  0xd7   :  { %v414_v33 = vpop.f32.mrf.mxu1 }
  0xd8   :  { %v772_v34 = vclamps-f32 %v528_v30, 1.0  ;;  %v415_v35 = vadd.f32 %v414_v33, %v365_v31  ;;  %v520_v33 = vld [vmem:[%s1204_s3 + $0x70] sm:$0xff] }
  0xda   :  { %576 = vst [vmem:[%s1205_s4 + $0x30] sm:$0xff] %v772_v34  ;;  %v464_v37 = vadd.f32 %v463_v10, %v415_v35  ;;  %v430_v10 = vadd.f32 %v429_v60, %v1111_v9 }
  0xdc   :  { %v497_v39 = vmul.f32 %v1075_v32, %v464_v37 }
  0xdd   :  { %v471_v40 = vpop.f32.mrf.mxu2  ;;  %v434_v37 = vpop.f32.mrf.mxu3 }
  0xde   :  { %v529_v41 = vadd.f32 %v513_v38, %v497_v39  ;;  %v368_v42 = vpop.f32.mrf.mxu0  ;;  %v435_v38 = vadd.f32 %v434_v37, %v1129_v36 }
  0xdf   :  { %v417_v43 = vpop.f32.mrf.mxu1 }
  0xe0   :  { %v773_v44 = vclamps-f32 %v529_v41, 1.0  ;;  %v418_v45 = vadd.f32 %v417_v43, %v368_v42  ;;  %v521_v42 = vld [vmem:[%s1204_s3 + $0x78] sm:$0xff] }
  0xe2   :  { %577 = vst [vmem:[%s1205_s4 + $0x38] sm:$0xff] %v773_v44  ;;  %v467_v46 = vadd.f32 %v466_v19, %v418_v45 }
  0xe4   :  { %v498_v49 = vmul.f32 %v1075_v32, %v467_v46 }
  0xe5   :  { %v473_v50 = vpop.f32.mrf.mxu2 }
  0xe6   :  { %v530_v51 = vadd.f32 %v514_v48, %v498_v49  ;;  %v370_v52 = vpop.f32.mrf.mxu0 }
  0xe7   :  { %v419_v53 = vpop.f32.mrf.mxu1 }
  0xe8   :  { %v774_v54 = vclamps-f32 %v530_v51, 1.0  ;;  %v420_v55 = vadd.f32 %v419_v53, %v370_v52 }
  0xea   :  { %578 = vst [vmem:[%s1205_s4 + $0x40] sm:$0xff] %v774_v54  ;;  %v469_v56 = vadd.f32 %v468_v29, %v420_v55 }
  0xec   :  { %v499_v59 = vmul.f32 %v1075_v32, %v469_v56 }
  0xed   :  { %v476_v62 = vpop.f32.mrf.mxu2 }
  0xee   :  { %v531_v63 = vadd.f32 %v515_v57, %v499_v59  ;;  %v477_v0 = vadd.f32 %v476_v62, %v428_v58  ;;  %v373_v1 = vpop.f32.mrf.mxu0 }
  0xef   :  { %v422_v3 = vpop.f32.mrf.mxu1 }
  0xf0   :  { %v775_v4 = vclamps-f32 %v531_v63, 1.0  ;;  %v502_v5 = vmul.f32 %v1075_v32, %v477_v0  ;;  %v423_v6 = vadd.f32 %v422_v3, %v373_v1 }
  0xf2   :  { %579 = vst [vmem:[%s1205_s4 + $0x48] sm:$0xff] %v775_v4  ;;  %v534_v61 = vadd.f32 %v518_v2, %v502_v5  ;;  %v472_v7 = vadd.f32 %v471_v40, %v423_v6 }
  0xf4   :  { %v778_v11 = vclamps-f32 %v534_v61, 1.0  ;;  %v500_v12 = vmul.f32 %v1075_v32, %v472_v7 }
  0xf5   :  { %v478_v13 = vpop.f32.mrf.mxu2 }
  0xf6   :  { %582 = vst [vmem:[%s1205_s4 + $0x60] sm:$0xff] %v778_v11  ;;  %v532_v14 = vadd.f32 %v516_v8, %v500_v12  ;;  %v479_v15 = vadd.f32 %v478_v13, %v430_v10  ;;  %v375_v16 = vpop.f32.mrf.mxu0 }
  0xf7   :  { %v424_v19 = vpop.f32.mrf.mxu1 }
  0xf8   :  { %v776_v20 = vclamps-f32 %v532_v14, 1.0  ;;  %v503_v9 = vmul.f32 %v1075_v32, %v479_v15  ;;  %v425_v21 = vadd.f32 %v424_v19, %v375_v16 }
  0xfa   :  { %580 = vst [vmem:[%s1205_s4 + $0x50] sm:$0xff] %v776_v20  ;;  %v535_v23 = vadd.f32 %v519_v18, %v503_v9  ;;  %v474_v24 = vadd.f32 %v473_v50, %v425_v21 }
  0xfc   :  { %v779_v27 = vclamps-f32 %v535_v23, 1.0  ;;  %v501_v28 = vmul.f32 %v1075_v32, %v474_v24 }
  0xfd   :  { %v481_v29 = vpop.f32.mrf.mxu2 }
  0xfe   :  { %583 = vst [vmem:[%s1205_s4 + $0x68] sm:$0xff] %v779_v27  ;;  %v533_v30 = vadd.f32 %v517_v25, %v501_v28  ;;  %v482_v31 = vadd.f32 %v481_v29, %v433_v26 }
 0x100   :  { %v777_v34 = vclamps-f32 %v533_v30, 1.0  ;;  %v504_v35 = vmul.f32 %v1075_v32, %v482_v31 }
 0x102   :  { %581 = vst [vmem:[%s1205_s4 + $0x58] sm:$0xff] %v777_v34  ;;  %v536_v22 = vadd.f32 %v520_v33, %v504_v35 }
 0x104   :  { %v780_v39 = vclamps-f32 %v536_v22, 1.0 }
 0x105   :  { %v483_v40 = vpop.f32.mrf.mxu2 }
 0x106   :  { %584 = vst [vmem:[%s1205_s4 + $0x70] sm:$0xff] %v780_v39  ;;  %v484_v41 = vadd.f32 %v483_v40, %v435_v38 }
 0x108   :  { %v505_v43 = vmul.f32 %v1075_v32, %v484_v41 }
 0x10a   :  { %v537_v44 = vadd.f32 %v521_v42, %v505_v43 }
 0x10c   :  { %v781_v45 = vclamps-f32 %v537_v44, 1.0 }
 0x10e   :  { %585 = vst [vmem:[%s1205_s4 + $0x78] sm:$0xff] %v781_v45 }

</bundles_post_ra>
